<compile_context>
chip_gen: v6e
topology: v6e:2x2x1
jax: 0.10.0
libtpu: 0.0.40
codegen_flags: <defaults>
</compile_context>

<pallas_src>
import numpy as np
import jax
import jax.numpy as jnp
from jax.experimental import pallas as pl
from jax.experimental.pallas import tpu as pltpu


# ------------------------------------------------------------ fused kernel ----
def _decoder_fused_kernel(z_ref, lw_ref, lb_ref,
                          bw0_ref, bb0_ref, g0_ref, gt0_ref, gm0_ref, bt0_ref,
                          bw1_ref, bb1_ref, g1_ref, gt1_ref, gm1_ref, bt1_ref,
                          bw2_ref, bb2_ref,
                          o_ref,
                          xu0_ref, xu1_ref, xu2_ref):
    f32 = jnp.float32
    B = z_ref.shape[0]

    def pad_rows(xu_ref):
        # zero the 1-row top/bottom halo of the padded, H-upsampled buffer
        Hp, WC = xu_ref.shape[1], xu_ref.shape[2]
        zero = jnp.zeros((B, 1, WC), f32)
        xu_ref[:, 0:1, :] = zero
        xu_ref[:, Hp - 1:Hp, :] = zero

    def store_row_pair(xu_ref, h, row3):          # row3: (B, 1, WC)
        # nearest-neighbor x2 upsample along H == duplicate each row
        xu_ref[:, 2 * h + 1:2 * h + 2, :] = row3
        xu_ref[:, 2 * h + 2:2 * h + 3, :] = row3

    def fill_from_2d(xu_ref, y2d):
        # y2d: (B*H, W*C) rows ordered (b, h) -> H-upsampled + 1-row padded
        H = (xu_ref.shape[1] - 2) // 2
        y3 = y2d.reshape(B, H, xu_ref.shape[2])
        pad_rows(xu_ref)
        for h in range(H):
            store_row_pair(xu_ref, h, y3[:, h:h + 1, :])

    def conv(xu_ref, bw_ref, bb_ref):
        # 3x3 conv (stride 1, pad 1) of the x2-upsampled input.
        # W-upsample / W-pad / W-taps are pre-folded into the banded weight
        # bw (3, W_in*Cin, W_out*Cout); only the 3 H-taps remain -> 3 matmuls.
        Hp, WC = xu_ref.shape[1], xu_ref.shape[2]
        Hout = Hp - 2
        N = bw_ref.shape[2]
        acc = jnp.zeros((B * Hout, N), f32)
        for dy in range(3):
            xs = xu_ref[:, dy:dy + Hout, :].reshape(B * Hout, WC)
            acc = acc + jnp.dot(xs, bw_ref[dy], preferred_element_type=f32)
        return acc + bb_ref[...]                  # bias pre-tiled to (1, W*C)

    def bn_leaky(acc, g_ref, gt_ref, gm_ref, bt_ref):
        # training-mode BatchNorm (global over B,H,W; eps=1e-5) + LeakyReLU(0.01)
        rows, N = acc.shape
        C = g_ref.shape[1]
        inv_n = 1.0 / float(rows * (N // C))
        s1 = jnp.sum(acc, axis=0, keepdims=True)                       # (1, N)
        mean_c = jnp.dot(s1, g_ref[...], preferred_element_type=f32) * inv_n
        diff = acc - jnp.dot(mean_c, gt_ref[...], preferred_element_type=f32)
        s2 = jnp.sum(diff * diff, axis=0, keepdims=True)
        var_c = jnp.dot(s2, g_ref[...], preferred_element_type=f32) * inv_n
        scale_c = gm_ref[...] * jax.lax.rsqrt(var_c + 1e-5)            # (1, C)
        y = (diff * jnp.dot(scale_c, gt_ref[...], preferred_element_type=f32)
             + jnp.dot(bt_ref[...], gt_ref[...], preferred_element_type=f32))
        return jnp.where(y > 0, y, 0.01 * y)

    # ---- Linear: one matmul slab per decoder-input image row; weight columns
    #      are pre-permuted so each slab yields a (w, c)-ordered lane layout.
    zv = z_ref[...]
    H0 = lw_ref.shape[0]
    pad_rows(xu0_ref)
    for h in range(H0):
        xr = jnp.dot(zv, lw_ref[h], preferred_element_type=f32) + lb_ref[h]
        store_row_pair(xu0_ref, h, xr.reshape(B, 1, lw_ref.shape[2]))

    # ---- blocks 0/1: upsample-conv + BatchNorm + LeakyReLU
    y = bn_leaky(conv(xu0_ref, bw0_ref, bb0_ref),
                 g0_ref, gt0_ref, gm0_ref, bt0_ref)
    fill_from_2d(xu1_ref, y)
    y = bn_leaky(conv(xu1_ref, bw1_ref, bb1_ref),
                 g1_ref, gt1_ref, gm1_ref, bt1_ref)
    fill_from_2d(xu2_ref, y)

    # ---- block 2: upsample-conv + Sigmoid; lane-dense (B*H, W*C) output
    o_ref[...] = jax.nn.sigmoid(conv(xu2_ref, bw2_ref, bb2_ref))


# ------------------------------------------------------------ parameters ----
def init_decoder_params(key, input_shape, latent_dim, num_filters):
    in_channels = input_shape[0]
    filters = [num_filters, num_filters // 2, num_filters // 4]
    dec_in_shape = [filters[0], input_shape[1] // 8, input_shape[2] // 8]
    flattened = int(np.prod(dec_in_shape))
    in_dim = latent_dim + 384
    ks = jax.random.split(key, 8)
    params = {
        "lin_w": jax.random.normal(ks[0], (in_dim, flattened), jnp.float32)
                 * (1.0 / np.sqrt(in_dim)),
        "lin_b": jax.random.normal(ks[1], (1, flattened), jnp.float32) * 0.01,
        "dec_in_shape": dec_in_shape,
        "convs": [],
    }
    cins = filters
    couts = [filters[1], filters[2], in_channels]
    for i in range(3):
        wk, bk = jax.random.split(ks[2 + i])
        cin, cout = cins[i], couts[i]
        w = jax.random.normal(wk, (3, 3, cin, cout), jnp.float32) \
            * (1.0 / np.sqrt(9 * cin))                       # HWIO layout
        b = jax.random.normal(bk, (1, cout), jnp.float32) * 0.01
        gamma = jnp.ones((1, cout), jnp.float32)             # BN default init
        beta = jnp.zeros((1, cout), jnp.float32)
        params["convs"].append((w, b, gamma, beta))
    return params


def prepare_pallas_params(params):
    """One-time host-side repack: permuted linear weight slabs, banded conv
    weights that fold W-upsample/pad/taps, tiled biases, and the per-channel
    gather/scatter matrices used for the BN reduction."""
    F_, h0, w0 = params["dec_in_shape"]
    lin_w = np.asarray(params["lin_w"], np.float32)
    lin_b = np.asarray(params["lin_b"], np.float32)
    K = lin_w.shape[0]
    WC0 = w0 * F_

    # Linear -> per-row slabs, columns reordered NCHW-flat (c,h,w) -> (w, c).
    lw3 = np.zeros((h0, K, WC0), np.float32)
    lb3 = np.zeros((h0, 1, WC0), np.float32)
    for h in range(h0):
        for w in range(w0):
            for c in range(F_):
                src = (c * h0 + h) * w0 + w
                dst = w * F_ + c
                lw3[h, :, dst] = lin_w[:, src]
                lb3[h, 0, dst] = lin_b[0, src]

    prep = {"lin_w": jnp.asarray(lw3), "lin_b": jnp.asarray(lb3),
            "h0": h0, "blocks": []}

    W_in = w0
    for (cw, cb, gamma, beta) in params["convs"]:
        cw = np.asarray(cw, np.float32)              # (3, 3, Cin, Cout) HWIO
        cb = np.asarray(cb, np.float32).reshape(-1)  # (Cout,)
        Cin, Cout = cw.shape[2], cw.shape[3]
        W_out = 2 * W_in
        # banded weight: folds W-upsample (x2), pad=1 and the 3 W-taps.
        band = np.zeros((3, W_in * Cin, W_out * Cout), np.float32)
        for dy in range(3):
            for wo in range(W_out):
                for dx in range(3):
                    wp = wo + dx                     # padded-upsampled column
                    if 1 <= wp <= W_out:             # 0 / W_out+1 are zero pad
                        wi = (wp - 1) // 2           # raw (pre-upsample) col
                        band[dy,
                             wi * Cin:(wi + 1) * Cin,
                             wo * Cout:(wo + 1) * Cout] += cw[dy, dx]
        bias_full = np.tile(cb, W_out).reshape(1, W_out * Cout)
        G = np.zeros((W_out * Cout, Cout), np.float32)   # lane -> channel
        for wo in range(W_out):
            for c in range(Cout):
                G[wo * Cout + c, c] = 1.0
        prep["blocks"].append({
            "band": jnp.asarray(band),
            "bias": jnp.asarray(bias_full),
            "G": jnp.asarray(G),
            "GT": jnp.asarray(np.ascontiguousarray(G.T)),
            "gamma": jnp.asarray(np.asarray(gamma, np.float32)),
            "beta": jnp.asarray(np.asarray(beta, np.float32)),
            "Cin": Cin, "Cout": Cout, "W_in": W_in, "W_out": W_out,
        })
        W_in = W_out
    return prep


# --------------------------------------------------------------- forward ----
def _full_spec(shape):
    nd = len(shape)
    return pl.BlockSpec(shape, lambda i, _nd=nd: (0,) * _nd)


def decoder_forward(params, z, prepared=None):
    if prepared is None:
        prepared = prepare_pallas_params(params)
    B = z.shape[0]
    h0 = prepared["h0"]
    blocks = prepared["blocks"]

    args = [z, prepared["lin_w"], prepared["lin_b"]]
    for blk in blocks[:2]:
        args += [blk["band"], blk["bias"], blk["G"], blk["GT"],
                 blk["gamma"], blk["beta"]]
    args += [blocks[2]["band"], blocks[2]["bias"]]

    Hf = 8 * h0
    Wf = blocks[2]["W_out"]
    Cf = blocks[2]["Cout"]
    Nf = Wf * Cf

    scratch = []
    H_in = h0
    for blk in blocks:
        scratch.append(pltpu.VMEM((B, 2 * H_in + 2, blk["W_in"] * blk["Cin"]),
                                  jnp.float32))
        H_in *= 2

    out2d = pl.pallas_call(
        _decoder_fused_kernel,
        out_shape=jax.ShapeDtypeStruct((B * Hf, Nf), jnp.float32),
        grid=(1,),
        in_specs=[_full_spec(a.shape) for a in args],
        out_specs=_full_spec((B * Hf, Nf)),
        scratch_shapes=scratch,
        compiler_params=pltpu.CompilerParams(
            dimension_semantics=("arbitrary",)),
    )(*args)

    # rows are (b, h); lanes are (w, c)  ->  NCHW at the PyTorch boundary
    return out2d.reshape(B, Hf, Wf, Cf).transpose(0, 3, 1, 2)


# ---------------------------------------------------- pure-JAX reference ----
def upsample_nearest2(x):  # NHWC nearest-neighbor x2 (matches torch trick)
    B, H, W, C = x.shape
    x = jnp.broadcast_to(x[:, :, None, :, None, :], (B, H, 2, W, 2, C))
    return x.reshape(B, 2 * H, 2 * W, C)


def decoder_reference(params, z):
    x = z @ params["lin_w"] + params["lin_b"]
    F_, h, w = params["dec_in_shape"]
    x = x.reshape(-1, F_, h, w)
    x = jnp.transpose(x, (0, 2, 3, 1))
    for i, (cw, cb, g, bt) in enumerate(params["convs"]):
        x = upsample_nearest2(x)
        x = jax.lax.conv_general_dilated(
            x, cw, window_strides=(1, 1), padding=((1, 1), (1, 1)),
            dimension_numbers=("NHWC", "HWIO", "NHWC")) + cb.reshape(1, 1, 1, -1)
        if i < 2:
            mean = jnp.mean(x, axis=(0, 1, 2), keepdims=True)
            var = jnp.mean((x - mean) ** 2, axis=(0, 1, 2), keepdims=True)
            x = g.reshape(1, 1, 1, -1) * (x - mean) * jax.lax.rsqrt(var + 1e-5) \
                + bt.reshape(1, 1, 1, -1)
            x = jnp.where(x > 0, x, 0.01 * x)
        else:
            x = jax.nn.sigmoid(x)
    return jnp.transpose(x, (0, 3, 1, 2))


if __name__ == "__main__":
    input_shape = (4, 16, 16)    # (C, H, W)
    latent_dim = 8
    num_filters = 16             # filters = [16, 8, 4]
    B = 2

    key = jax.random.PRNGKey(0)
    pkey, zkey = jax.random.split(key)
    params = init_decoder_params(pkey, input_shape, latent_dim, num_filters)
    prepared = prepare_pallas_params(params)
    z = jax.random.normal(zkey, (B, latent_dim + 384), jnp.float32)

    fwd = jax.jit(lambda zz: decoder_forward(params, zz, prepared))
    out = jax.block_until_ready(fwd(z))
    assert out.shape == (B,) + input_shape

    ref = jax.block_until_ready(decoder_reference(params, z))
    np.testing.assert_allclose(np.asarray(out), np.asarray(ref),
                               rtol=2e-4, atol=1e-4)
    print("KERNEL_OK")
</pallas_src>

<mosaic_0001>
module attributes {stable_mosaic.version = 11 : i64} {
  func.func @_decoder_fused_kernel(%arg0: i32, %arg1: memref<2x392xf32, #tpu.memory_space<vmem>>, %arg2: memref<2x392x32xf32, #tpu.memory_space<vmem>>, %arg3: memref<2x1x32xf32, #tpu.memory_space<vmem>>, %arg4: memref<3x32x32xf32, #tpu.memory_space<vmem>>, %arg5: memref<1x32xf32, #tpu.memory_space<vmem>>, %arg6: memref<32x8xf32, #tpu.memory_space<vmem>>, %arg7: memref<8x32xf32, #tpu.memory_space<vmem>>, %arg8: memref<1x8xf32, #tpu.memory_space<vmem>>, %arg9: memref<1x8xf32, #tpu.memory_space<vmem>>, %arg10: memref<3x32x32xf32, #tpu.memory_space<vmem>>, %arg11: memref<1x32xf32, #tpu.memory_space<vmem>>, %arg12: memref<32x4xf32, #tpu.memory_space<vmem>>, %arg13: memref<4x32xf32, #tpu.memory_space<vmem>>, %arg14: memref<1x4xf32, #tpu.memory_space<vmem>>, %arg15: memref<1x4xf32, #tpu.memory_space<vmem>>, %arg16: memref<3x32x64xf32, #tpu.memory_space<vmem>>, %arg17: memref<1x64xf32, #tpu.memory_space<vmem>>, %arg18: memref<32x64xf32, #tpu.memory_space<vmem>>, %arg19: memref<2x6x32xf32, #tpu.memory_space<vmem>>, %arg20: memref<2x10x32xf32, #tpu.memory_space<vmem>>, %arg21: memref<2x18x32xf32, #tpu.memory_space<vmem>>) attributes {dimension_semantics = [#tpu.dimension_semantics<arbitrary>], iteration_bounds = array<i64: 1>, scalar_prefetch = 0 : i64, scratch_operands = 3 : i64, tpu.core_type = #tpu.core_type<tc>, window_params = [{pipeline_mode = #tpu.pipeline_mode<synchronous>, transform_indices = @transform_0, window_bounds = array<i64: 2, 392>}, {pipeline_mode = #tpu.pipeline_mode<synchronous>, transform_indices = @transform_1, window_bounds = array<i64: 2, 392, 32>}, {pipeline_mode = #tpu.pipeline_mode<synchronous>, transform_indices = @transform_2, window_bounds = array<i64: 2, 1, 32>}, {pipeline_mode = #tpu.pipeline_mode<synchronous>, transform_indices = @transform_3, window_bounds = array<i64: 3, 32, 32>}, {pipeline_mode = #tpu.pipeline_mode<synchronous>, transform_indices = @transform_4, window_bounds = array<i64: 1, 32>}, {pipeline_mode = #tpu.pipeline_mode<synchronous>, transform_indices = @transform_5, window_bounds = array<i64: 32, 8>}, {pipeline_mode = #tpu.pipeline_mode<synchronous>, transform_indices = @transform_6, window_bounds = array<i64: 8, 32>}, {pipeline_mode = #tpu.pipeline_mode<synchronous>, transform_indices = @transform_7, window_bounds = array<i64: 1, 8>}, {pipeline_mode = #tpu.pipeline_mode<synchronous>, transform_indices = @transform_8, window_bounds = array<i64: 1, 8>}, {pipeline_mode = #tpu.pipeline_mode<synchronous>, transform_indices = @transform_9, window_bounds = array<i64: 3, 32, 32>}, {pipeline_mode = #tpu.pipeline_mode<synchronous>, transform_indices = @transform_10, window_bounds = array<i64: 1, 32>}, {pipeline_mode = #tpu.pipeline_mode<synchronous>, transform_indices = @transform_11, window_bounds = array<i64: 32, 4>}, {pipeline_mode = #tpu.pipeline_mode<synchronous>, transform_indices = @transform_12, window_bounds = array<i64: 4, 32>}, {pipeline_mode = #tpu.pipeline_mode<synchronous>, transform_indices = @transform_13, window_bounds = array<i64: 1, 4>}, {pipeline_mode = #tpu.pipeline_mode<synchronous>, transform_indices = @transform_14, window_bounds = array<i64: 1, 4>}, {pipeline_mode = #tpu.pipeline_mode<synchronous>, transform_indices = @transform_15, window_bounds = array<i64: 3, 32, 64>}, {pipeline_mode = #tpu.pipeline_mode<synchronous>, transform_indices = @transform_16, window_bounds = array<i64: 1, 64>}, {pipeline_mode = #tpu.pipeline_mode<synchronous>, transform_indices = @transform_17, window_bounds = array<i64: 32, 64>}]} {
    %c0 = arith.constant 0 : index
    %c0_0 = arith.constant 0 : index
    %0 = vector.load %arg1[%c0, %c0_0] : memref<2x392xf32, #tpu.memory_space<vmem>>, vector<2x392xf32>
    %cst = arith.constant 0.000000e+00 : f32
    %1 = vector.broadcast %cst : f32 to vector<2x1x32xf32>
    %c0_1 = arith.constant 0 : index
    %c0_2 = arith.constant 0 : index
    %c0_3 = arith.constant 0 : index
    %2 = vector.load %arg19[%c0_1, %c0_2, %c0_3] : memref<2x6x32xf32, #tpu.memory_space<vmem>>, vector<2x1x32xf32>
    tpu.vector_store %arg19[%c0_1, %c0_2, %c0_3], %1 {strides = array<i32>} : memref<2x6x32xf32, #tpu.memory_space<vmem>>, vector<2x1x32xf32>,
    %c0_4 = arith.constant 0 : index
    %c5 = arith.constant 5 : index
    %c0_5 = arith.constant 0 : index
    %3 = vector.load %arg19[%c0_4, %c5, %c0_5] : memref<2x6x32xf32, #tpu.memory_space<vmem>>, vector<2x1x32xf32>
    tpu.vector_store %arg19[%c0_4, %c5, %c0_5], %1 {strides = array<i32>} : memref<2x6x32xf32, #tpu.memory_space<vmem>>, vector<2x1x32xf32>,
    %c0_6 = arith.constant 0 : index
    %c0_7 = arith.constant 0 : index
    %c0_8 = arith.constant 0 : index
    %4 = vector.load %arg2[%c0_6, %c0_7, %c0_8] : memref<2x392x32xf32, #tpu.memory_space<vmem>>, vector<1x392x32xf32>
    %5 = vector.shape_cast %4 : vector<1x392x32xf32> to vector<392x32xf32>
    %cst_9 = arith.constant dense<0.000000e+00> : vector<2x32xf32>
    %6 = tpu.matmul %0, %5, %cst_9 {dimension_numbers = #tpu.dot_dimension_numbers<[1], [0], [0], [1], [0, 0, 1, 1], [], []>} : vector<2x392xf32>, vector<392x32xf32>, vector<2x32xf32> -> vector<2x32xf32>
    %c0_10 = arith.constant 0 : index
    %c0_11 = arith.constant 0 : index
    %c0_12 = arith.constant 0 : index
    %7 = vector.load %arg3[%c0_10, %c0_11, %c0_12] : memref<2x1x32xf32, #tpu.memory_space<vmem>>, vector<1x1x32xf32>
    %8 = vector.shape_cast %7 : vector<1x1x32xf32> to vector<1x32xf32>
    %9 = vector.broadcast %8 : vector<1x32xf32> to vector<2x32xf32>
    %10 = arith.addf %6, %9 : vector<2x32xf32>
    %11 = vector.shape_cast %10 : vector<2x32xf32> to vector<2x1x32xf32>
    %c0_13 = arith.constant 0 : index
    %c1 = arith.constant 1 : index
    %c0_14 = arith.constant 0 : index
    %12 = vector.load %arg19[%c0_13, %c1, %c0_14] : memref<2x6x32xf32, #tpu.memory_space<vmem>>, vector<2x1x32xf32>
    tpu.vector_store %arg19[%c0_13, %c1, %c0_14], %11 {strides = array<i32>} : memref<2x6x32xf32, #tpu.memory_space<vmem>>, vector<2x1x32xf32>,
    %c0_15 = arith.constant 0 : index
    %c2 = arith.constant 2 : index
    %c0_16 = arith.constant 0 : index
    %13 = vector.load %arg19[%c0_15, %c2, %c0_16] : memref<2x6x32xf32, #tpu.memory_space<vmem>>, vector<2x1x32xf32>
    tpu.vector_store %arg19[%c0_15, %c2, %c0_16], %11 {strides = array<i32>} : memref<2x6x32xf32, #tpu.memory_space<vmem>>, vector<2x1x32xf32>,
    %c1_17 = arith.constant 1 : index
    %c0_18 = arith.constant 0 : index
    %c0_19 = arith.constant 0 : index
    %14 = vector.load %arg2[%c1_17, %c0_18, %c0_19] : memref<2x392x32xf32, #tpu.memory_space<vmem>>, vector<1x392x32xf32>
    %15 = vector.shape_cast %14 : vector<1x392x32xf32> to vector<392x32xf32>
    %cst_20 = arith.constant dense<0.000000e+00> : vector<2x32xf32>
    %16 = tpu.matmul %0, %15, %cst_20 {dimension_numbers = #tpu.dot_dimension_numbers<[1], [0], [0], [1], [0, 0, 1, 1], [], []>} : vector<2x392xf32>, vector<392x32xf32>, vector<2x32xf32> -> vector<2x32xf32>
    %c1_21 = arith.constant 1 : index
    %c0_22 = arith.constant 0 : index
    %c0_23 = arith.constant 0 : index
    %17 = vector.load %arg3[%c1_21, %c0_22, %c0_23] : memref<2x1x32xf32, #tpu.memory_space<vmem>>, vector<1x1x32xf32>
    %18 = vector.shape_cast %17 : vector<1x1x32xf32> to vector<1x32xf32>
    %19 = vector.broadcast %18 : vector<1x32xf32> to vector<2x32xf32>
    %20 = arith.addf %16, %19 : vector<2x32xf32>
    %21 = vector.shape_cast %20 : vector<2x32xf32> to vector<2x1x32xf32>
    %c0_24 = arith.constant 0 : index
    %c3 = arith.constant 3 : index
    %c0_25 = arith.constant 0 : index
    %22 = vector.load %arg19[%c0_24, %c3, %c0_25] : memref<2x6x32xf32, #tpu.memory_space<vmem>>, vector<2x1x32xf32>
    tpu.vector_store %arg19[%c0_24, %c3, %c0_25], %21 {strides = array<i32>} : memref<2x6x32xf32, #tpu.memory_space<vmem>>, vector<2x1x32xf32>,
    %c0_26 = arith.constant 0 : index
    %c4 = arith.constant 4 : index
    %c0_27 = arith.constant 0 : index
    %23 = vector.load %arg19[%c0_26, %c4, %c0_27] : memref<2x6x32xf32, #tpu.memory_space<vmem>>, vector<2x1x32xf32>
    tpu.vector_store %arg19[%c0_26, %c4, %c0_27], %21 {strides = array<i32>} : memref<2x6x32xf32, #tpu.memory_space<vmem>>, vector<2x1x32xf32>,
    %cst_28 = arith.constant 0.000000e+00 : f32
    %24 = vector.broadcast %cst_28 : f32 to vector<8x32xf32>
    %c0_29 = arith.constant 0 : index
    %c0_30 = arith.constant 0 : index
    %c0_31 = arith.constant 0 : index
    %25 = vector.load %arg19[%c0_29, %c0_30, %c0_31] : memref<2x6x32xf32, #tpu.memory_space<vmem>>, vector<2x4x32xf32>
    %26 = vector.shape_cast %25 : vector<2x4x32xf32> to vector<8x32xf32>
    %c0_32 = arith.constant 0 : index
    %c0_33 = arith.constant 0 : index
    %c0_34 = arith.constant 0 : index
    %27 = vector.load %arg4[%c0_32, %c0_33, %c0_34] : memref<3x32x32xf32, #tpu.memory_space<vmem>>, vector<1x32x32xf32>
    %28 = vector.shape_cast %27 : vector<1x32x32xf32> to vector<32x32xf32>
    %cst_35 = arith.constant dense<0.000000e+00> : vector<8x32xf32>
    %29 = tpu.matmul %26, %28, %cst_35 {dimension_numbers = #tpu.dot_dimension_numbers<[1], [0], [0], [1], [0, 0, 1, 1], [], []>} : vector<8x32xf32>, vector<32x32xf32>, vector<8x32xf32> -> vector<8x32xf32>
    %30 = arith.addf %24, %29 : vector<8x32xf32>
    %c0_36 = arith.constant 0 : index
    %c1_37 = arith.constant 1 : index
    %c0_38 = arith.constant 0 : index
    %31 = vector.load %arg19[%c0_36, %c1_37, %c0_38] : memref<2x6x32xf32, #tpu.memory_space<vmem>>, vector<2x4x32xf32>
    %32 = vector.shape_cast %31 : vector<2x4x32xf32> to vector<8x32xf32>
    %c1_39 = arith.constant 1 : index
    %c0_40 = arith.constant 0 : index
    %c0_41 = arith.constant 0 : index
    %33 = vector.load %arg4[%c1_39, %c0_40, %c0_41] : memref<3x32x32xf32, #tpu.memory_space<vmem>>, vector<1x32x32xf32>
    %34 = vector.shape_cast %33 : vector<1x32x32xf32> to vector<32x32xf32>
    %cst_42 = arith.constant dense<0.000000e+00> : vector<8x32xf32>
    %35 = tpu.matmul %32, %34, %cst_42 {dimension_numbers = #tpu.dot_dimension_numbers<[1], [0], [0], [1], [0, 0, 1, 1], [], []>} : vector<8x32xf32>, vector<32x32xf32>, vector<8x32xf32> -> vector<8x32xf32>
    %36 = arith.addf %30, %35 : vector<8x32xf32>
    %c0_43 = arith.constant 0 : index
    %c2_44 = arith.constant 2 : index
    %c0_45 = arith.constant 0 : index
    %37 = vector.load %arg19[%c0_43, %c2_44, %c0_45] : memref<2x6x32xf32, #tpu.memory_space<vmem>>, vector<2x4x32xf32>
    %38 = vector.shape_cast %37 : vector<2x4x32xf32> to vector<8x32xf32>
    %c2_46 = arith.constant 2 : index
    %c0_47 = arith.constant 0 : index
    %c0_48 = arith.constant 0 : index
    %39 = vector.load %arg4[%c2_46, %c0_47, %c0_48] : memref<3x32x32xf32, #tpu.memory_space<vmem>>, vector<1x32x32xf32>
    %40 = vector.shape_cast %39 : vector<1x32x32xf32> to vector<32x32xf32>
    %cst_49 = arith.constant dense<0.000000e+00> : vector<8x32xf32>
    %41 = tpu.matmul %38, %40, %cst_49 {dimension_numbers = #tpu.dot_dimension_numbers<[1], [0], [0], [1], [0, 0, 1, 1], [], []>} : vector<8x32xf32>, vector<32x32xf32>, vector<8x32xf32> -> vector<8x32xf32>
    %42 = arith.addf %36, %41 : vector<8x32xf32>
    %c0_50 = arith.constant 0 : index
    %c0_51 = arith.constant 0 : index
    %43 = vector.load %arg5[%c0_50, %c0_51] : memref<1x32xf32, #tpu.memory_space<vmem>>, vector<1x32xf32>
    %44 = vector.broadcast %43 : vector<1x32xf32> to vector<8x32xf32>
    %45 = arith.addf %42, %44 : vector<8x32xf32>
    %cst_52 = arith.constant dense<0.000000e+00> : vector<32xf32>
    %46 = vector.multi_reduction <add>, %45, %cst_52 [0] : vector<8x32xf32> to vector<32xf32>
    %47 = vector.shape_cast %46 : vector<32xf32> to vector<1x32xf32>
    %c0_53 = arith.constant 0 : index
    %c0_54 = arith.constant 0 : index
    %48 = vector.load %arg6[%c0_53, %c0_54] : memref<32x8xf32, #tpu.memory_space<vmem>>, vector<32x8xf32>
    %cst_55 = arith.constant dense<0.000000e+00> : vector<1x8xf32>
    %49 = tpu.matmul %47, %48, %cst_55 {dimension_numbers = #tpu.dot_dimension_numbers<[1], [0], [0], [1], [0, 0, 1, 1], [], []>} : vector<1x32xf32>, vector<32x8xf32>, vector<1x8xf32> -> vector<1x8xf32>
    %cst_56 = arith.constant 3.125000e-02 : f32
    %50 = vector.broadcast %cst_56 : f32 to vector<1x8xf32>
    %51 = arith.mulf %49, %50 : vector<1x8xf32>
    %c0_57 = arith.constant 0 : index
    %c0_58 = arith.constant 0 : index
    %52 = vector.load %arg7[%c0_57, %c0_58] : memref<8x32xf32, #tpu.memory_space<vmem>>, vector<8x32xf32>
    %cst_59 = arith.constant dense<0.000000e+00> : vector<1x32xf32>
    %53 = tpu.matmul %51, %52, %cst_59 {dimension_numbers = #tpu.dot_dimension_numbers<[1], [0], [0], [1], [0, 0, 1, 1], [], []>} : vector<1x8xf32>, vector<8x32xf32>, vector<1x32xf32> -> vector<1x32xf32>
    %54 = vector.broadcast %53 : vector<1x32xf32> to vector<8x32xf32>
    %55 = arith.subf %45, %54 : vector<8x32xf32>
    %56 = arith.mulf %55, %55 : vector<8x32xf32>
    %cst_60 = arith.constant dense<0.000000e+00> : vector<32xf32>
    %57 = vector.multi_reduction <add>, %56, %cst_60 [0] : vector<8x32xf32> to vector<32xf32>
    %58 = vector.shape_cast %57 : vector<32xf32> to vector<1x32xf32>
    %c0_61 = arith.constant 0 : index
    %c0_62 = arith.constant 0 : index
    %59 = vector.load %arg6[%c0_61, %c0_62] : memref<32x8xf32, #tpu.memory_space<vmem>>, vector<32x8xf32>
    %cst_63 = arith.constant dense<0.000000e+00> : vector<1x8xf32>
    %60 = tpu.matmul %58, %59, %cst_63 {dimension_numbers = #tpu.dot_dimension_numbers<[1], [0], [0], [1], [0, 0, 1, 1], [], []>} : vector<1x32xf32>, vector<32x8xf32>, vector<1x8xf32> -> vector<1x8xf32>
    %cst_64 = arith.constant 3.125000e-02 : f32
    %61 = vector.broadcast %cst_64 : f32 to vector<1x8xf32>
    %62 = arith.mulf %60, %61 : vector<1x8xf32>
    %c0_65 = arith.constant 0 : index
    %c0_66 = arith.constant 0 : index
    %63 = vector.load %arg8[%c0_65, %c0_66] : memref<1x8xf32, #tpu.memory_space<vmem>>, vector<1x8xf32>
    %cst_67 = arith.constant 9.99999974E-6 : f32
    %64 = vector.broadcast %cst_67 : f32 to vector<1x8xf32>
    %65 = arith.addf %62, %64 : vector<1x8xf32>
    %66 = math.rsqrt %65 : vector<1x8xf32>
    %67 = arith.mulf %63, %66 : vector<1x8xf32>
    %c0_68 = arith.constant 0 : index
    %c0_69 = arith.constant 0 : index
    %68 = vector.load %arg7[%c0_68, %c0_69] : memref<8x32xf32, #tpu.memory_space<vmem>>, vector<8x32xf32>
    %cst_70 = arith.constant dense<0.000000e+00> : vector<1x32xf32>
    %69 = tpu.matmul %67, %68, %cst_70 {dimension_numbers = #tpu.dot_dimension_numbers<[1], [0], [0], [1], [0, 0, 1, 1], [], []>} : vector<1x8xf32>, vector<8x32xf32>, vector<1x32xf32> -> vector<1x32xf32>
    %70 = vector.broadcast %69 : vector<1x32xf32> to vector<8x32xf32>
    %71 = arith.mulf %55, %70 : vector<8x32xf32>
    %c0_71 = arith.constant 0 : index
    %c0_72 = arith.constant 0 : index
    %72 = vector.load %arg9[%c0_71, %c0_72] : memref<1x8xf32, #tpu.memory_space<vmem>>, vector<1x8xf32>
    %c0_73 = arith.constant 0 : index
    %c0_74 = arith.constant 0 : index
    %73 = vector.load %arg7[%c0_73, %c0_74] : memref<8x32xf32, #tpu.memory_space<vmem>>, vector<8x32xf32>
    %cst_75 = arith.constant dense<0.000000e+00> : vector<1x32xf32>
    %74 = tpu.matmul %72, %73, %cst_75 {dimension_numbers = #tpu.dot_dimension_numbers<[1], [0], [0], [1], [0, 0, 1, 1], [], []>} : vector<1x8xf32>, vector<8x32xf32>, vector<1x32xf32> -> vector<1x32xf32>
    %75 = vector.broadcast %74 : vector<1x32xf32> to vector<8x32xf32>
    %76 = arith.addf %71, %75 : vector<8x32xf32>
    %cst_76 = arith.constant 0.000000e+00 : f32
    %77 = vector.broadcast %cst_76 : f32 to vector<8x32xf32>
    %78 = arith.cmpf ogt, %76, %77 : vector<8x32xf32>
    %cst_77 = arith.constant 0.00999999977 : f32
    %79 = vector.broadcast %cst_77 : f32 to vector<8x32xf32>
    %80 = arith.mulf %79, %76 : vector<8x32xf32>
    %81 = arith.select %78, %76, %80 : vector<8x32xi1>, vector<8x32xf32>
    %82 = vector.shape_cast %81 : vector<8x32xf32> to vector<2x4x32xf32>
    %cst_78 = arith.constant 0.000000e+00 : f32
    %83 = vector.broadcast %cst_78 : f32 to vector<2x1x32xf32>
    %c0_79 = arith.constant 0 : index
    %c0_80 = arith.constant 0 : index
    %c0_81 = arith.constant 0 : index
    %84 = vector.load %arg20[%c0_79, %c0_80, %c0_81] : memref<2x10x32xf32, #tpu.memory_space<vmem>>, vector<2x1x32xf32>
    tpu.vector_store %arg20[%c0_79, %c0_80, %c0_81], %83 {strides = array<i32>} : memref<2x10x32xf32, #tpu.memory_space<vmem>>, vector<2x1x32xf32>,
    %c0_82 = arith.constant 0 : index
    %c9 = arith.constant 9 : index
    %c0_83 = arith.constant 0 : index
    %85 = vector.load %arg20[%c0_82, %c9, %c0_83] : memref<2x10x32xf32, #tpu.memory_space<vmem>>, vector<2x1x32xf32>
    tpu.vector_store %arg20[%c0_82, %c9, %c0_83], %83 {strides = array<i32>} : memref<2x10x32xf32, #tpu.memory_space<vmem>>, vector<2x1x32xf32>,
    %86 = vector.extract_strided_slice %82 {offsets = [0, 0, 0], sizes = [2, 1, 32], strides = [1, 1, 1]} : vector<2x4x32xf32> to vector<2x1x32xf32>
    %c0_84 = arith.constant 0 : index
    %c1_85 = arith.constant 1 : index
    %c0_86 = arith.constant 0 : index
    %87 = vector.load %arg20[%c0_84, %c1_85, %c0_86] : memref<2x10x32xf32, #tpu.memory_space<vmem>>, vector<2x1x32xf32>
    tpu.vector_store %arg20[%c0_84, %c1_85, %c0_86], %86 {strides = array<i32>} : memref<2x10x32xf32, #tpu.memory_space<vmem>>, vector<2x1x32xf32>,
    %c0_87 = arith.constant 0 : index
    %c2_88 = arith.constant 2 : index
    %c0_89 = arith.constant 0 : index
    %88 = vector.load %arg20[%c0_87, %c2_88, %c0_89] : memref<2x10x32xf32, #tpu.memory_space<vmem>>, vector<2x1x32xf32>
    tpu.vector_store %arg20[%c0_87, %c2_88, %c0_89], %86 {strides = array<i32>} : memref<2x10x32xf32, #tpu.memory_space<vmem>>, vector<2x1x32xf32>,
    %89 = vector.extract_strided_slice %82 {offsets = [0, 1, 0], sizes = [2, 1, 32], strides = [1, 1, 1]} : vector<2x4x32xf32> to vector<2x1x32xf32>
    %c0_90 = arith.constant 0 : index
    %c3_91 = arith.constant 3 : index
    %c0_92 = arith.constant 0 : index
    %90 = vector.load %arg20[%c0_90, %c3_91, %c0_92] : memref<2x10x32xf32, #tpu.memory_space<vmem>>, vector<2x1x32xf32>
    tpu.vector_store %arg20[%c0_90, %c3_91, %c0_92], %89 {strides = array<i32>} : memref<2x10x32xf32, #tpu.memory_space<vmem>>, vector<2x1x32xf32>,
    %c0_93 = arith.constant 0 : index
    %c4_94 = arith.constant 4 : index
    %c0_95 = arith.constant 0 : index
    %91 = vector.load %arg20[%c0_93, %c4_94, %c0_95] : memref<2x10x32xf32, #tpu.memory_space<vmem>>, vector<2x1x32xf32>
    tpu.vector_store %arg20[%c0_93, %c4_94, %c0_95], %89 {strides = array<i32>} : memref<2x10x32xf32, #tpu.memory_space<vmem>>, vector<2x1x32xf32>,
    %92 = vector.extract_strided_slice %82 {offsets = [0, 2, 0], sizes = [2, 1, 32], strides = [1, 1, 1]} : vector<2x4x32xf32> to vector<2x1x32xf32>
    %c0_96 = arith.constant 0 : index
    %c5_97 = arith.constant 5 : index
    %c0_98 = arith.constant 0 : index
    %93 = vector.load %arg20[%c0_96, %c5_97, %c0_98] : memref<2x10x32xf32, #tpu.memory_space<vmem>>, vector<2x1x32xf32>
    tpu.vector_store %arg20[%c0_96, %c5_97, %c0_98], %92 {strides = array<i32>} : memref<2x10x32xf32, #tpu.memory_space<vmem>>, vector<2x1x32xf32>,
    %c0_99 = arith.constant 0 : index
    %c6 = arith.constant 6 : index
    %c0_100 = arith.constant 0 : index
    %94 = vector.load %arg20[%c0_99, %c6, %c0_100] : memref<2x10x32xf32, #tpu.memory_space<vmem>>, vector<2x1x32xf32>
    tpu.vector_store %arg20[%c0_99, %c6, %c0_100], %92 {strides = array<i32>} : memref<2x10x32xf32, #tpu.memory_space<vmem>>, vector<2x1x32xf32>,
    %95 = vector.extract_strided_slice %82 {offsets = [0, 3, 0], sizes = [2, 1, 32], strides = [1, 1, 1]} : vector<2x4x32xf32> to vector<2x1x32xf32>
    %c0_101 = arith.constant 0 : index
    %c7 = arith.constant 7 : index
    %c0_102 = arith.constant 0 : index
    %96 = vector.load %arg20[%c0_101, %c7, %c0_102] : memref<2x10x32xf32, #tpu.memory_space<vmem>>, vector<2x1x32xf32>
    tpu.vector_store %arg20[%c0_101, %c7, %c0_102], %95 {strides = array<i32>} : memref<2x10x32xf32, #tpu.memory_space<vmem>>, vector<2x1x32xf32>,
    %c0_103 = arith.constant 0 : index
    %c8 = arith.constant 8 : index
    %c0_104 = arith.constant 0 : index
    %97 = vector.load %arg20[%c0_103, %c8, %c0_104] : memref<2x10x32xf32, #tpu.memory_space<vmem>>, vector<2x1x32xf32>
    tpu.vector_store %arg20[%c0_103, %c8, %c0_104], %95 {strides = array<i32>} : memref<2x10x32xf32, #tpu.memory_space<vmem>>, vector<2x1x32xf32>,
    %cst_105 = arith.constant 0.000000e+00 : f32
    %98 = vector.broadcast %cst_105 : f32 to vector<16x32xf32>
    %c0_106 = arith.constant 0 : index
    %c0_107 = arith.constant 0 : index
    %c0_108 = arith.constant 0 : index
    %99 = vector.load %arg20[%c0_106, %c0_107, %c0_108] : memref<2x10x32xf32, #tpu.memory_space<vmem>>, vector<2x8x32xf32>
    %100 = vector.shape_cast %99 : vector<2x8x32xf32> to vector<16x32xf32>
    %c0_109 = arith.constant 0 : index
    %c0_110 = arith.constant 0 : index
    %c0_111 = arith.constant 0 : index
    %101 = vector.load %arg10[%c0_109, %c0_110, %c0_111] : memref<3x32x32xf32, #tpu.memory_space<vmem>>, vector<1x32x32xf32>
    %102 = vector.shape_cast %101 : vector<1x32x32xf32> to vector<32x32xf32>
    %cst_112 = arith.constant dense<0.000000e+00> : vector<16x32xf32>
    %103 = tpu.matmul %100, %102, %cst_112 {dimension_numbers = #tpu.dot_dimension_numbers<[1], [0], [0], [1], [0, 0, 1, 1], [], []>} : vector<16x32xf32>, vector<32x32xf32>, vector<16x32xf32> -> vector<16x32xf32>
    %104 = arith.addf %98, %103 : vector<16x32xf32>
    %c0_113 = arith.constant 0 : index
    %c1_114 = arith.constant 1 : index
    %c0_115 = arith.constant 0 : index
    %105 = vector.load %arg20[%c0_113, %c1_114, %c0_115] : memref<2x10x32xf32, #tpu.memory_space<vmem>>, vector<2x8x32xf32>
    %106 = vector.shape_cast %105 : vector<2x8x32xf32> to vector<16x32xf32>
    %c1_116 = arith.constant 1 : index
    %c0_117 = arith.constant 0 : index
    %c0_118 = arith.constant 0 : index
    %107 = vector.load %arg10[%c1_116, %c0_117, %c0_118] : memref<3x32x32xf32, #tpu.memory_space<vmem>>, vector<1x32x32xf32>
    %108 = vector.shape_cast %107 : vector<1x32x32xf32> to vector<32x32xf32>
    %cst_119 = arith.constant dense<0.000000e+00> : vector<16x32xf32>
    %109 = tpu.matmul %106, %108, %cst_119 {dimension_numbers = #tpu.dot_dimension_numbers<[1], [0], [0], [1], [0, 0, 1, 1], [], []>} : vector<16x32xf32>, vector<32x32xf32>, vector<16x32xf32> -> vector<16x32xf32>
    %110 = arith.addf %104, %109 : vector<16x32xf32>
    %c0_120 = arith.constant 0 : index
    %c2_121 = arith.constant 2 : index
    %c0_122 = arith.constant 0 : index
    %111 = vector.load %arg20[%c0_120, %c2_121, %c0_122] : memref<2x10x32xf32, #tpu.memory_space<vmem>>, vector<2x8x32xf32>
    %112 = vector.shape_cast %111 : vector<2x8x32xf32> to vector<16x32xf32>
    %c2_123 = arith.constant 2 : index
    %c0_124 = arith.constant 0 : index
    %c0_125 = arith.constant 0 : index
    %113 = vector.load %arg10[%c2_123, %c0_124, %c0_125] : memref<3x32x32xf32, #tpu.memory_space<vmem>>, vector<1x32x32xf32>
    %114 = vector.shape_cast %113 : vector<1x32x32xf32> to vector<32x32xf32>
    %cst_126 = arith.constant dense<0.000000e+00> : vector<16x32xf32>
    %115 = tpu.matmul %112, %114, %cst_126 {dimension_numbers = #tpu.dot_dimension_numbers<[1], [0], [0], [1], [0, 0, 1, 1], [], []>} : vector<16x32xf32>, vector<32x32xf32>, vector<16x32xf32> -> vector<16x32xf32>
    %116 = arith.addf %110, %115 : vector<16x32xf32>
    %c0_127 = arith.constant 0 : index
    %c0_128 = arith.constant 0 : index
    %117 = vector.load %arg11[%c0_127, %c0_128] : memref<1x32xf32, #tpu.memory_space<vmem>>, vector<1x32xf32>
    %118 = vector.broadcast %117 : vector<1x32xf32> to vector<16x32xf32>
    %119 = arith.addf %116, %118 : vector<16x32xf32>
    %cst_129 = arith.constant dense<0.000000e+00> : vector<32xf32>
    %120 = vector.multi_reduction <add>, %119, %cst_129 [0] : vector<16x32xf32> to vector<32xf32>
    %121 = vector.shape_cast %120 : vector<32xf32> to vector<1x32xf32>
    %c0_130 = arith.constant 0 : index
    %c0_131 = arith.constant 0 : index
    %122 = vector.load %arg12[%c0_130, %c0_131] : memref<32x4xf32, #tpu.memory_space<vmem>>, vector<32x4xf32>
    %cst_132 = arith.constant dense<0.000000e+00> : vector<1x4xf32>
    %123 = tpu.matmul %121, %122, %cst_132 {dimension_numbers = #tpu.dot_dimension_numbers<[1], [0], [0], [1], [0, 0, 1, 1], [], []>} : vector<1x32xf32>, vector<32x4xf32>, vector<1x4xf32> -> vector<1x4xf32>
    %cst_133 = arith.constant 7.812500e-03 : f32
    %124 = vector.broadcast %cst_133 : f32 to vector<1x4xf32>
    %125 = arith.mulf %123, %124 : vector<1x4xf32>
    %c0_134 = arith.constant 0 : index
    %c0_135 = arith.constant 0 : index
    %126 = vector.load %arg13[%c0_134, %c0_135] : memref<4x32xf32, #tpu.memory_space<vmem>>, vector<4x32xf32>
    %cst_136 = arith.constant dense<0.000000e+00> : vector<1x32xf32>
    %127 = tpu.matmul %125, %126, %cst_136 {dimension_numbers = #tpu.dot_dimension_numbers<[1], [0], [0], [1], [0, 0, 1, 1], [], []>} : vector<1x4xf32>, vector<4x32xf32>, vector<1x32xf32> -> vector<1x32xf32>
    %128 = vector.broadcast %127 : vector<1x32xf32> to vector<16x32xf32>
    %129 = arith.subf %119, %128 : vector<16x32xf32>
    %130 = arith.mulf %129, %129 : vector<16x32xf32>
    %cst_137 = arith.constant dense<0.000000e+00> : vector<32xf32>
    %131 = vector.multi_reduction <add>, %130, %cst_137 [0] : vector<16x32xf32> to vector<32xf32>
    %132 = vector.shape_cast %131 : vector<32xf32> to vector<1x32xf32>
    %c0_138 = arith.constant 0 : index
    %c0_139 = arith.constant 0 : index
    %133 = vector.load %arg12[%c0_138, %c0_139] : memref<32x4xf32, #tpu.memory_space<vmem>>, vector<32x4xf32>
    %cst_140 = arith.constant dense<0.000000e+00> : vector<1x4xf32>
    %134 = tpu.matmul %132, %133, %cst_140 {dimension_numbers = #tpu.dot_dimension_numbers<[1], [0], [0], [1], [0, 0, 1, 1], [], []>} : vector<1x32xf32>, vector<32x4xf32>, vector<1x4xf32> -> vector<1x4xf32>
    %cst_141 = arith.constant 7.812500e-03 : f32
    %135 = vector.broadcast %cst_141 : f32 to vector<1x4xf32>
    %136 = arith.mulf %134, %135 : vector<1x4xf32>
    %c0_142 = arith.constant 0 : index
    %c0_143 = arith.constant 0 : index
    %137 = vector.load %arg14[%c0_142, %c0_143] : memref<1x4xf32, #tpu.memory_space<vmem>>, vector<1x4xf32>
    %cst_144 = arith.constant 9.99999974E-6 : f32
    %138 = vector.broadcast %cst_144 : f32 to vector<1x4xf32>
    %139 = arith.addf %136, %138 : vector<1x4xf32>
    %140 = math.rsqrt %139 : vector<1x4xf32>
    %141 = arith.mulf %137, %140 : vector<1x4xf32>
    %c0_145 = arith.constant 0 : index
    %c0_146 = arith.constant 0 : index
    %142 = vector.load %arg13[%c0_145, %c0_146] : memref<4x32xf32, #tpu.memory_space<vmem>>, vector<4x32xf32>
    %cst_147 = arith.constant dense<0.000000e+00> : vector<1x32xf32>
    %143 = tpu.matmul %141, %142, %cst_147 {dimension_numbers = #tpu.dot_dimension_numbers<[1], [0], [0], [1], [0, 0, 1, 1], [], []>} : vector<1x4xf32>, vector<4x32xf32>, vector<1x32xf32> -> vector<1x32xf32>
    %144 = vector.broadcast %143 : vector<1x32xf32> to vector<16x32xf32>
    %145 = arith.mulf %129, %144 : vector<16x32xf32>
    %c0_148 = arith.constant 0 : index
    %c0_149 = arith.constant 0 : index
    %146 = vector.load %arg15[%c0_148, %c0_149] : memref<1x4xf32, #tpu.memory_space<vmem>>, vector<1x4xf32>
    %c0_150 = arith.constant 0 : index
    %c0_151 = arith.constant 0 : index
    %147 = vector.load %arg13[%c0_150, %c0_151] : memref<4x32xf32, #tpu.memory_space<vmem>>, vector<4x32xf32>
    %cst_152 = arith.constant dense<0.000000e+00> : vector<1x32xf32>
    %148 = tpu.matmul %146, %147, %cst_152 {dimension_numbers = #tpu.dot_dimension_numbers<[1], [0], [0], [1], [0, 0, 1, 1], [], []>} : vector<1x4xf32>, vector<4x32xf32>, vector<1x32xf32> -> vector<1x32xf32>
    %149 = vector.broadcast %148 : vector<1x32xf32> to vector<16x32xf32>
    %150 = arith.addf %145, %149 : vector<16x32xf32>
    %cst_153 = arith.constant 0.000000e+00 : f32
    %151 = vector.broadcast %cst_153 : f32 to vector<16x32xf32>
    %152 = arith.cmpf ogt, %150, %151 : vector<16x32xf32>
    %cst_154 = arith.constant 0.00999999977 : f32
    %153 = vector.broadcast %cst_154 : f32 to vector<16x32xf32>
    %154 = arith.mulf %153, %150 : vector<16x32xf32>
    %155 = arith.select %152, %150, %154 : vector<16x32xi1>, vector<16x32xf32>
    %156 = vector.shape_cast %155 : vector<16x32xf32> to vector<2x8x32xf32>
    %cst_155 = arith.constant 0.000000e+00 : f32
    %157 = vector.broadcast %cst_155 : f32 to vector<2x1x32xf32>
    %c0_156 = arith.constant 0 : index
    %c0_157 = arith.constant 0 : index
    %c0_158 = arith.constant 0 : index
    %158 = vector.load %arg21[%c0_156, %c0_157, %c0_158] : memref<2x18x32xf32, #tpu.memory_space<vmem>>, vector<2x1x32xf32>
    tpu.vector_store %arg21[%c0_156, %c0_157, %c0_158], %157 {strides = array<i32>} : memref<2x18x32xf32, #tpu.memory_space<vmem>>, vector<2x1x32xf32>,
    %c0_159 = arith.constant 0 : index
    %c17 = arith.constant 17 : index
    %c0_160 = arith.constant 0 : index
    %159 = vector.load %arg21[%c0_159, %c17, %c0_160] : memref<2x18x32xf32, #tpu.memory_space<vmem>>, vector<2x1x32xf32>
    tpu.vector_store %arg21[%c0_159, %c17, %c0_160], %157 {strides = array<i32>} : memref<2x18x32xf32, #tpu.memory_space<vmem>>, vector<2x1x32xf32>,
    %160 = vector.extract_strided_slice %156 {offsets = [0, 0, 0], sizes = [2, 1, 32], strides = [1, 1, 1]} : vector<2x8x32xf32> to vector<2x1x32xf32>
    %c0_161 = arith.constant 0 : index
    %c1_162 = arith.constant 1 : index
    %c0_163 = arith.constant 0 : index
    %161 = vector.load %arg21[%c0_161, %c1_162, %c0_163] : memref<2x18x32xf32, #tpu.memory_space<vmem>>, vector<2x1x32xf32>
    tpu.vector_store %arg21[%c0_161, %c1_162, %c0_163], %160 {strides = array<i32>} : memref<2x18x32xf32, #tpu.memory_space<vmem>>, vector<2x1x32xf32>,
    %c0_164 = arith.constant 0 : index
    %c2_165 = arith.constant 2 : index
    %c0_166 = arith.constant 0 : index
    %162 = vector.load %arg21[%c0_164, %c2_165, %c0_166] : memref<2x18x32xf32, #tpu.memory_space<vmem>>, vector<2x1x32xf32>
    tpu.vector_store %arg21[%c0_164, %c2_165, %c0_166], %160 {strides = array<i32>} : memref<2x18x32xf32, #tpu.memory_space<vmem>>, vector<2x1x32xf32>,
    %163 = vector.extract_strided_slice %156 {offsets = [0, 1, 0], sizes = [2, 1, 32], strides = [1, 1, 1]} : vector<2x8x32xf32> to vector<2x1x32xf32>
    %c0_167 = arith.constant 0 : index
    %c3_168 = arith.constant 3 : index
    %c0_169 = arith.constant 0 : index
    %164 = vector.load %arg21[%c0_167, %c3_168, %c0_169] : memref<2x18x32xf32, #tpu.memory_space<vmem>>, vector<2x1x32xf32>
    tpu.vector_store %arg21[%c0_167, %c3_168, %c0_169], %163 {strides = array<i32>} : memref<2x18x32xf32, #tpu.memory_space<vmem>>, vector<2x1x32xf32>,
    %c0_170 = arith.constant 0 : index
    %c4_171 = arith.constant 4 : index
    %c0_172 = arith.constant 0 : index
    %165 = vector.load %arg21[%c0_170, %c4_171, %c0_172] : memref<2x18x32xf32, #tpu.memory_space<vmem>>, vector<2x1x32xf32>
    tpu.vector_store %arg21[%c0_170, %c4_171, %c0_172], %163 {strides = array<i32>} : memref<2x18x32xf32, #tpu.memory_space<vmem>>, vector<2x1x32xf32>,
    %166 = vector.extract_strided_slice %156 {offsets = [0, 2, 0], sizes = [2, 1, 32], strides = [1, 1, 1]} : vector<2x8x32xf32> to vector<2x1x32xf32>
    %c0_173 = arith.constant 0 : index
    %c5_174 = arith.constant 5 : index
    %c0_175 = arith.constant 0 : index
    %167 = vector.load %arg21[%c0_173, %c5_174, %c0_175] : memref<2x18x32xf32, #tpu.memory_space<vmem>>, vector<2x1x32xf32>
    tpu.vector_store %arg21[%c0_173, %c5_174, %c0_175], %166 {strides = array<i32>} : memref<2x18x32xf32, #tpu.memory_space<vmem>>, vector<2x1x32xf32>,
    %c0_176 = arith.constant 0 : index
    %c6_177 = arith.constant 6 : index
    %c0_178 = arith.constant 0 : index
    %168 = vector.load %arg21[%c0_176, %c6_177, %c0_178] : memref<2x18x32xf32, #tpu.memory_space<vmem>>, vector<2x1x32xf32>
    tpu.vector_store %arg21[%c0_176, %c6_177, %c0_178], %166 {strides = array<i32>} : memref<2x18x32xf32, #tpu.memory_space<vmem>>, vector<2x1x32xf32>,
    %169 = vector.extract_strided_slice %156 {offsets = [0, 3, 0], sizes = [2, 1, 32], strides = [1, 1, 1]} : vector<2x8x32xf32> to vector<2x1x32xf32>
    %c0_179 = arith.constant 0 : index
    %c7_180 = arith.constant 7 : index
    %c0_181 = arith.constant 0 : index
    %170 = vector.load %arg21[%c0_179, %c7_180, %c0_181] : memref<2x18x32xf32, #tpu.memory_space<vmem>>, vector<2x1x32xf32>
    tpu.vector_store %arg21[%c0_179, %c7_180, %c0_181], %169 {strides = array<i32>} : memref<2x18x32xf32, #tpu.memory_space<vmem>>, vector<2x1x32xf32>,
    %c0_182 = arith.constant 0 : index
    %c8_183 = arith.constant 8 : index
    %c0_184 = arith.constant 0 : index
    %171 = vector.load %arg21[%c0_182, %c8_183, %c0_184] : memref<2x18x32xf32, #tpu.memory_space<vmem>>, vector<2x1x32xf32>
    tpu.vector_store %arg21[%c0_182, %c8_183, %c0_184], %169 {strides = array<i32>} : memref<2x18x32xf32, #tpu.memory_space<vmem>>, vector<2x1x32xf32>,
    %172 = vector.extract_strided_slice %156 {offsets = [0, 4, 0], sizes = [2, 1, 32], strides = [1, 1, 1]} : vector<2x8x32xf32> to vector<2x1x32xf32>
    %c0_185 = arith.constant 0 : index
    %c9_186 = arith.constant 9 : index
    %c0_187 = arith.constant 0 : index
    %173 = vector.load %arg21[%c0_185, %c9_186, %c0_187] : memref<2x18x32xf32, #tpu.memory_space<vmem>>, vector<2x1x32xf32>
    tpu.vector_store %arg21[%c0_185, %c9_186, %c0_187], %172 {strides = array<i32>} : memref<2x18x32xf32, #tpu.memory_space<vmem>>, vector<2x1x32xf32>,
    %c0_188 = arith.constant 0 : index
    %c10 = arith.constant 10 : index
    %c0_189 = arith.constant 0 : index
    %174 = vector.load %arg21[%c0_188, %c10, %c0_189] : memref<2x18x32xf32, #tpu.memory_space<vmem>>, vector<2x1x32xf32>
    tpu.vector_store %arg21[%c0_188, %c10, %c0_189], %172 {strides = array<i32>} : memref<2x18x32xf32, #tpu.memory_space<vmem>>, vector<2x1x32xf32>,
    %175 = vector.extract_strided_slice %156 {offsets = [0, 5, 0], sizes = [2, 1, 32], strides = [1, 1, 1]} : vector<2x8x32xf32> to vector<2x1x32xf32>
    %c0_190 = arith.constant 0 : index
    %c11 = arith.constant 11 : index
    %c0_191 = arith.constant 0 : index
    %176 = vector.load %arg21[%c0_190, %c11, %c0_191] : memref<2x18x32xf32, #tpu.memory_space<vmem>>, vector<2x1x32xf32>
    tpu.vector_store %arg21[%c0_190, %c11, %c0_191], %175 {strides = array<i32>} : memref<2x18x32xf32, #tpu.memory_space<vmem>>, vector<2x1x32xf32>,
    %c0_192 = arith.constant 0 : index
    %c12 = arith.constant 12 : index
    %c0_193 = arith.constant 0 : index
    %177 = vector.load %arg21[%c0_192, %c12, %c0_193] : memref<2x18x32xf32, #tpu.memory_space<vmem>>, vector<2x1x32xf32>
    tpu.vector_store %arg21[%c0_192, %c12, %c0_193], %175 {strides = array<i32>} : memref<2x18x32xf32, #tpu.memory_space<vmem>>, vector<2x1x32xf32>,
    %178 = vector.extract_strided_slice %156 {offsets = [0, 6, 0], sizes = [2, 1, 32], strides = [1, 1, 1]} : vector<2x8x32xf32> to vector<2x1x32xf32>
    %c0_194 = arith.constant 0 : index
    %c13 = arith.constant 13 : index
    %c0_195 = arith.constant 0 : index
    %179 = vector.load %arg21[%c0_194, %c13, %c0_195] : memref<2x18x32xf32, #tpu.memory_space<vmem>>, vector<2x1x32xf32>
    tpu.vector_store %arg21[%c0_194, %c13, %c0_195], %178 {strides = array<i32>} : memref<2x18x32xf32, #tpu.memory_space<vmem>>, vector<2x1x32xf32>,
    %c0_196 = arith.constant 0 : index
    %c14 = arith.constant 14 : index
    %c0_197 = arith.constant 0 : index
    %180 = vector.load %arg21[%c0_196, %c14, %c0_197] : memref<2x18x32xf32, #tpu.memory_space<vmem>>, vector<2x1x32xf32>
    tpu.vector_store %arg21[%c0_196, %c14, %c0_197], %178 {strides = array<i32>} : memref<2x18x32xf32, #tpu.memory_space<vmem>>, vector<2x1x32xf32>,
    %181 = vector.extract_strided_slice %156 {offsets = [0, 7, 0], sizes = [2, 1, 32], strides = [1, 1, 1]} : vector<2x8x32xf32> to vector<2x1x32xf32>
    %c0_198 = arith.constant 0 : index
    %c15 = arith.constant 15 : index
    %c0_199 = arith.constant 0 : index
    %182 = vector.load %arg21[%c0_198, %c15, %c0_199] : memref<2x18x32xf32, #tpu.memory_space<vmem>>, vector<2x1x32xf32>
    tpu.vector_store %arg21[%c0_198, %c15, %c0_199], %181 {strides = array<i32>} : memref<2x18x32xf32, #tpu.memory_space<vmem>>, vector<2x1x32xf32>,
    %c0_200 = arith.constant 0 : index
    %c16 = arith.constant 16 : index
    %c0_201 = arith.constant 0 : index
    %183 = vector.load %arg21[%c0_200, %c16, %c0_201] : memref<2x18x32xf32, #tpu.memory_space<vmem>>, vector<2x1x32xf32>
    tpu.vector_store %arg21[%c0_200, %c16, %c0_201], %181 {strides = array<i32>} : memref<2x18x32xf32, #tpu.memory_space<vmem>>, vector<2x1x32xf32>,
    %cst_202 = arith.constant 0.000000e+00 : f32
    %184 = vector.broadcast %cst_202 : f32 to vector<32x64xf32>
    %c0_203 = arith.constant 0 : index
    %c0_204 = arith.constant 0 : index
    %c0_205 = arith.constant 0 : index
    %185 = vector.load %arg21[%c0_203, %c0_204, %c0_205] : memref<2x18x32xf32, #tpu.memory_space<vmem>>, vector<2x16x32xf32>
    %186 = vector.shape_cast %185 : vector<2x16x32xf32> to vector<32x32xf32>
    %c0_206 = arith.constant 0 : index
    %c0_207 = arith.constant 0 : index
    %c0_208 = arith.constant 0 : index
    %187 = vector.load %arg16[%c0_206, %c0_207, %c0_208] : memref<3x32x64xf32, #tpu.memory_space<vmem>>, vector<1x32x64xf32>
    %188 = vector.shape_cast %187 : vector<1x32x64xf32> to vector<32x64xf32>
    %cst_209 = arith.constant dense<0.000000e+00> : vector<32x64xf32>
    %189 = tpu.matmul %186, %188, %cst_209 {dimension_numbers = #tpu.dot_dimension_numbers<[1], [0], [0], [1], [0, 0, 1, 1], [], []>} : vector<32x32xf32>, vector<32x64xf32>, vector<32x64xf32> -> vector<32x64xf32>
    %190 = arith.addf %184, %189 : vector<32x64xf32>
    %c0_210 = arith.constant 0 : index
    %c1_211 = arith.constant 1 : index
    %c0_212 = arith.constant 0 : index
    %191 = vector.load %arg21[%c0_210, %c1_211, %c0_212] : memref<2x18x32xf32, #tpu.memory_space<vmem>>, vector<2x16x32xf32>
    %192 = vector.shape_cast %191 : vector<2x16x32xf32> to vector<32x32xf32>
    %c1_213 = arith.constant 1 : index
    %c0_214 = arith.constant 0 : index
    %c0_215 = arith.constant 0 : index
    %193 = vector.load %arg16[%c1_213, %c0_214, %c0_215] : memref<3x32x64xf32, #tpu.memory_space<vmem>>, vector<1x32x64xf32>
    %194 = vector.shape_cast %193 : vector<1x32x64xf32> to vector<32x64xf32>
    %cst_216 = arith.constant dense<0.000000e+00> : vector<32x64xf32>
    %195 = tpu.matmul %192, %194, %cst_216 {dimension_numbers = #tpu.dot_dimension_numbers<[1], [0], [0], [1], [0, 0, 1, 1], [], []>} : vector<32x32xf32>, vector<32x64xf32>, vector<32x64xf32> -> vector<32x64xf32>
    %196 = arith.addf %190, %195 : vector<32x64xf32>
    %c0_217 = arith.constant 0 : index
    %c2_218 = arith.constant 2 : index
    %c0_219 = arith.constant 0 : index
    %197 = vector.load %arg21[%c0_217, %c2_218, %c0_219] : memref<2x18x32xf32, #tpu.memory_space<vmem>>, vector<2x16x32xf32>
    %198 = vector.shape_cast %197 : vector<2x16x32xf32> to vector<32x32xf32>
    %c2_220 = arith.constant 2 : index
    %c0_221 = arith.constant 0 : index
    %c0_222 = arith.constant 0 : index
    %199 = vector.load %arg16[%c2_220, %c0_221, %c0_222] : memref<3x32x64xf32, #tpu.memory_space<vmem>>, vector<1x32x64xf32>
    %200 = vector.shape_cast %199 : vector<1x32x64xf32> to vector<32x64xf32>
    %cst_223 = arith.constant dense<0.000000e+00> : vector<32x64xf32>
    %201 = tpu.matmul %198, %200, %cst_223 {dimension_numbers = #tpu.dot_dimension_numbers<[1], [0], [0], [1], [0, 0, 1, 1], [], []>} : vector<32x32xf32>, vector<32x64xf32>, vector<32x64xf32> -> vector<32x64xf32>
    %202 = arith.addf %196, %201 : vector<32x64xf32>
    %c0_224 = arith.constant 0 : index
    %c0_225 = arith.constant 0 : index
    %203 = vector.load %arg17[%c0_224, %c0_225] : memref<1x64xf32, #tpu.memory_space<vmem>>, vector<1x64xf32>
    %204 = vector.broadcast %203 : vector<1x64xf32> to vector<32x64xf32>
    %205 = arith.addf %202, %204 : vector<32x64xf32>
    %206 = arith.negf %205 : vector<32x64xf32>
    %207 = math.exp %206 : vector<32x64xf32>
    %cst_226 = arith.constant 1.000000e+00 : f32
    %208 = vector.broadcast %cst_226 : f32 to vector<32x64xf32>
    %209 = arith.addf %208, %207 : vector<32x64xf32>
    %210 = arith.divf %208, %209 : vector<32x64xf32>
    %c0_227 = arith.constant 0 : index
    %c0_228 = arith.constant 0 : index
    %211 = vector.load %arg18[%c0_227, %c0_228] : memref<32x64xf32, #tpu.memory_space<vmem>>, vector<32x64xf32>
    tpu.vector_store %arg18[%c0_227, %c0_228], %210 {strides = array<i32>} : memref<32x64xf32, #tpu.memory_space<vmem>>, vector<32x64xf32>,
    return
  }
  func.func @transform_0(%arg0: i32) -> (i32, i32) {
    %c0_i32 = arith.constant 0 : i32
    %c0_i32_0 = arith.constant 0 : i32
    %c0_i32_1 = arith.constant 0 : i32
    return %c0_i32, %c0_i32_0 : i32, i32
  }
  func.func @transform_1(%arg0: i32) -> (i32, i32, i32) {
    %c0_i32 = arith.constant 0 : i32
    %c0_i32_0 = arith.constant 0 : i32
    %c0_i32_1 = arith.constant 0 : i32
    %c0_i32_2 = arith.constant 0 : i32
    return %c0_i32, %c0_i32_0, %c0_i32_1 : i32, i32, i32
  }
  func.func @transform_2(%arg0: i32) -> (i32, i32, i32) {
    %c0_i32 = arith.constant 0 : i32
    %c0_i32_0 = arith.constant 0 : i32
    %c0_i32_1 = arith.constant 0 : i32
    %c0_i32_2 = arith.constant 0 : i32
    return %c0_i32, %c0_i32_0, %c0_i32_1 : i32, i32, i32
  }
  func.func @transform_3(%arg0: i32) -> (i32, i32, i32) {
    %c0_i32 = arith.constant 0 : i32
    %c0_i32_0 = arith.constant 0 : i32
    %c0_i32_1 = arith.constant 0 : i32
    %c0_i32_2 = arith.constant 0 : i32
    return %c0_i32, %c0_i32_0, %c0_i32_1 : i32, i32, i32
  }
  func.func @transform_4(%arg0: i32) -> (i32, i32) {
    %c0_i32 = arith.constant 0 : i32
    %c0_i32_0 = arith.constant 0 : i32
    %c0_i32_1 = arith.constant 0 : i32
    return %c0_i32, %c0_i32_0 : i32, i32
  }
  func.func @transform_5(%arg0: i32) -> (i32, i32) {
    %c0_i32 = arith.constant 0 : i32
    %c0_i32_0 = arith.constant 0 : i32
    %c0_i32_1 = arith.constant 0 : i32
    return %c0_i32, %c0_i32_0 : i32, i32
  }
  func.func @transform_6(%arg0: i32) -> (i32, i32) {
    %c0_i32 = arith.constant 0 : i32
    %c0_i32_0 = arith.constant 0 : i32
    %c0_i32_1 = arith.constant 0 : i32
    return %c0_i32, %c0_i32_0 : i32, i32
  }
  func.func @transform_7(%arg0: i32) -> (i32, i32) {
    %c0_i32 = arith.constant 0 : i32
    %c0_i32_0 = arith.constant 0 : i32
    %c0_i32_1 = arith.constant 0 : i32
    return %c0_i32, %c0_i32_0 : i32, i32
  }
  func.func @transform_8(%arg0: i32) -> (i32, i32) {
    %c0_i32 = arith.constant 0 : i32
    %c0_i32_0 = arith.constant 0 : i32
    %c0_i32_1 = arith.constant 0 : i32
    return %c0_i32, %c0_i32_0 : i32, i32
  }
  func.func @transform_9(%arg0: i32) -> (i32, i32, i32) {
    %c0_i32 = arith.constant 0 : i32
    %c0_i32_0 = arith.constant 0 : i32
    %c0_i32_1 = arith.constant 0 : i32
    %c0_i32_2 = arith.constant 0 : i32
    return %c0_i32, %c0_i32_0, %c0_i32_1 : i32, i32, i32
  }
  func.func @transform_10(%arg0: i32) -> (i32, i32) {
    %c0_i32 = arith.constant 0 : i32
    %c0_i32_0 = arith.constant 0 : i32
    %c0_i32_1 = arith.constant 0 : i32
    return %c0_i32, %c0_i32_0 : i32, i32
  }
  func.func @transform_11(%arg0: i32) -> (i32, i32) {
    %c0_i32 = arith.constant 0 : i32
    %c0_i32_0 = arith.constant 0 : i32
    %c0_i32_1 = arith.constant 0 : i32
    return %c0_i32, %c0_i32_0 : i32, i32
  }
  func.func @transform_12(%arg0: i32) -> (i32, i32) {
    %c0_i32 = arith.constant 0 : i32
    %c0_i32_0 = arith.constant 0 : i32
    %c0_i32_1 = arith.constant 0 : i32
    return %c0_i32, %c0_i32_0 : i32, i32
  }
  func.func @transform_13(%arg0: i32) -> (i32, i32) {
    %c0_i32 = arith.constant 0 : i32
    %c0_i32_0 = arith.constant 0 : i32
    %c0_i32_1 = arith.constant 0 : i32
    return %c0_i32, %c0_i32_0 : i32, i32
  }
  func.func @transform_14(%arg0: i32) -> (i32, i32) {
    %c0_i32 = arith.constant 0 : i32
    %c0_i32_0 = arith.constant 0 : i32
    %c0_i32_1 = arith.constant 0 : i32
    return %c0_i32, %c0_i32_0 : i32, i32
  }
  func.func @transform_15(%arg0: i32) -> (i32, i32, i32) {
    %c0_i32 = arith.constant 0 : i32
    %c0_i32_0 = arith.constant 0 : i32
    %c0_i32_1 = arith.constant 0 : i32
    %c0_i32_2 = arith.constant 0 : i32
    return %c0_i32, %c0_i32_0, %c0_i32_1 : i32, i32, i32
  }
  func.func @transform_16(%arg0: i32) -> (i32, i32) {
    %c0_i32 = arith.constant 0 : i32
    %c0_i32_0 = arith.constant 0 : i32
    %c0_i32_1 = arith.constant 0 : i32
    return %c0_i32, %c0_i32_0 : i32, i32
  }
  func.func @transform_17(%arg0: i32) -> (i32, i32) {
    %c0_i32 = arith.constant 0 : i32
    %c0_i32_0 = arith.constant 0 : i32
    %c0_i32_1 = arith.constant 0 : i32
    return %c0_i32, %c0_i32_0 : i32, i32
  }
}

</mosaic_0001>

<bundles_post_ra>
// kernel: _lambda_.1
= control target key start
LH: loop header
LB: loop body
LE: loop exit
PB: predicated region body
PF: predicated region fallthrough
CT: control target
= control target key end

     0   :  { %s3448_s0 = inlined_call_operand.hbm [shape: f32[2,392], index: 0, kind: input, shape index: {}]   ;;  %s3449_s1 = inlined_call_operand.hbm [shape: f32[2,392,32], index: 1, kind: input, shape index: {}]   ;;  %s3450_s2 = inlined_call_operand.vmem [shape: f32[2,1,32], index: 2, kind: input, shape index: {}]   ;;  %s3451_s3 = inlined_call_operand.hbm [shape: f32[3,32,32], index: 3, kind: input, shape index: {}]   ;;  %s3452_s4 = inlined_call_operand.vmem [shape: f32[1,32], index: 4, kind: input, shape index: {}]   ;;  %s3453_s5 = inlined_call_operand.hbm [shape: f32[32,8], index: 5, kind: input, shape index: {}]   ;;  %s3454_s6 = inlined_call_operand.vmem [shape: f32[8,32], index: 6, kind: input, shape index: {}]   ;;  %s3455_s7 = inlined_call_operand.vmem [shape: f32[1,8], index: 7, kind: input, shape index: {}]   ;;  %s3456_s8 = inlined_call_operand.vmem [shape: f32[1,8], index: 8, kind: input, shape index: {}]   ;;  %s3457_s9 = inlined_call_operand.hbm [shape: f32[3,32,32], index: 9, kind: input, shape index: {}]   ;;  %s3458_s10 = inlined_call_operand.vmem [shape: f32[1,32], index: 10, kind: input, shape index: {}]   ;;  %s3459_s11 = inlined_call_operand.hbm [shape: f32[32,4], index: 11, kind: input, shape index: {}]   ;;  %s3460_s12 = inlined_call_operand.vmem [shape: f32[4,32], index: 12, kind: input, shape index: {}]   ;;  %s3461_s13 = inlined_call_operand.vmem [shape: f32[1,4], index: 13, kind: input, shape index: {}]   ;;  %s3462_s14 = inlined_call_operand.vmem [shape: f32[1,4], index: 14, kind: input, shape index: {}]   ;;  %s3463_s15 = inlined_call_operand.hbm [shape: f32[3,32,64], index: 15, kind: input, shape index: {}]   ;;  %s3464_s16 = inlined_call_operand.vmem [shape: f32[1,64], index: 16, kind: input, shape index: {}]   ;;  %s3465_s17 = inlined_call_operand.vmem [shape: f32[32,64], index: 17, kind: output, shape index: {}]  }
   0x1   :  { %3466 = sst [smem:[#allocation20_spill]] %s3448_s0 }
   0x2   :  { %3467 = sst [smem:[#allocation21_spill]] %s3449_s1 }
   0x3   :  { %22 = vsyncpa [#allocation6], 0 }
   0x4   :  { %23 = vsyncpa [#allocation8], 0 }
   0x5   :  { %24 = vsyncpa [#allocation11], 0 }
   0x6   :  { %25 = vsyncpa [#allocation14], 0  ;;  %s3003_s24 = smov [#allocation7]  }
   0x7   :  { %s41_s25 = sshll.u32 %s3003_s24, 4  ;;  %s42_s25 = int_to_ptr.vmem [resolvable:$true] %s41_s25 }
   0x8   :  { %s2863_s26 = scalar_lea.vmem %s42_s25, 12544  ;;  %p2868_p1 = scmp.lt.s32.totalorder %s42_s25, %s42_s25 }
   0x9   :  { %p2864_p0 = scmp.ne.s32.totalorder %s42_s25, %s2863_s26  ;;  %p2869_p2 = scmp.lt.s32.totalorder %s2863_s26, %s2863_s26 }
   0xb   :  { %p2870_p3 = por %p2869_p2, %p2868_p1 }
   0xd   :  { %p2871_p4 = pnand %p2870_p3, %p2864_p0 }
   0xf   :  { %2874 = shalt.err (!%p2871_p4)
}
  0x10   :  { %s3004_s27 = smov 128   ;;  %s3005_s28 = smov 8  }
  0x11   :  { %s3468_s30 = sld [smem:[#allocation21_spill]]  ;;  %s3006_s18 = smov [#allocation10]  }
  0x12   :  { %s69_s19 = sshll.u32 %s3006_s18, 4  ;;  %s3007_s1 = smov [#allocation13]   ;;  %s70_s19 = int_to_ptr.vmem [resolvable:$true] %s69_s19 }
  0x13   :  { %s101_s20 = sshll.u32 %s3007_s1, 4  ;;  %s2883_s21 = scalar_lea.vmem %s70_s19, 512  ;;  %s102_s20 = int_to_ptr.vmem [resolvable:$true] %s101_s20 }
  0x14   :  { %p2884_p5 = scmp.ne.s32.totalorder %s70_s19, %s2883_s21  ;;  %p2888_p6 = scmp.lt.s32.totalorder %s70_s19, %s70_s19 }
  0x15   :  { %p2889_p7 = scmp.lt.s32.totalorder %s2883_s21, %s2883_s21 }
  0x17   :  { %47 = dma.hbm_to_vmem [thread:$0]  %s3468_s30, 12544, %s42_s25, [#allocation8], %s3004_s27, %s3004_s27, %s3005_s28  }
  0x18   :  { %p2890_p8 = por %p2889_p7, %p2888_p6 }
  0x1a   :  { %p2891_p9 = pnand %p2890_p8, %p2884_p5 }
  0x1c   :  { %2894 = shalt.err (!%p2891_p9)
}
  0x1d   :  { %75 = dma.hbm_to_vmem [thread:$0]  %s3453_s5, 512, %s70_s19, [#allocation11], %s3004_s27, %s3004_s27, %s3005_s28  }
  0x1e   :  { %s2903_s24 = scalar_lea.vmem %s102_s20, 512  ;;  %p2908_p11 = scmp.lt.s32.totalorder %s102_s20, %s102_s20 }
  0x1f   :  { %p2904_p10 = scmp.ne.s32.totalorder %s102_s20, %s2903_s24  ;;  %p2909_p12 = scmp.lt.s32.totalorder %s2903_s24, %s2903_s24 }
  0x21   :  { %p2910_p13 = por %p2909_p12, %p2908_p11 }
  0x23   :  { %p2911_p0 = pnand %p2910_p13, %p2904_p10 }
  0x25   :  { %2914 = shalt.err (!%p2911_p0)
}
  0x26   :  { %107 = dma.hbm_to_vmem [thread:$0]  %s3459_s11, 512, %s102_s20, [#allocation14], %s3004_s27, %s3004_s27, %s3005_s28  }
  0x27   :  { %s3008_s29 = smov [#allocation5]   ;;  %s3009_s30 = smov [#allocation9]  }
  0x28   :  { %s32_s0 = sshll.u32 %s3008_s29, 4  ;;  %s55_s5 = sshll.u32 %s3009_s30, 4  ;;  %s33_s0 = int_to_ptr.vmem [resolvable:$true] %s32_s0  ;;  %s56_s5 = int_to_ptr.vmem [resolvable:$true] %s55_s5 }
  0x29   :  { %s2923_s18 = scalar_lea.vmem %s33_s0, 128  ;;  %p2928_p2 = scmp.lt.s32.totalorder %s33_s0, %s33_s0 }
  0x2a   :  { %p2924_p1 = scmp.ne.s32.totalorder %s33_s0, %s2923_s18  ;;  %p2929_p3 = scmp.lt.s32.totalorder %s2923_s18, %s2923_s18 }
  0x2c   :  { %p2930_p4 = por %p2929_p3, %p2928_p2 }
  0x2e   :  { %p2931_p5 = pnand %p2930_p4, %p2924_p1 }
  0x30   :  { %2934 = shalt.err (!%p2931_p5)
}
  0x31   :  { %s3469_s21 = sld [smem:[#allocation20_spill]]  ;;  %s2943_s22 = scalar_lea.vmem %s56_s5, 1536 }
  0x32   :  { %p2944_p6 = scmp.ne.s32.totalorder %s56_s5, %s2943_s22  ;;  %p2948_p7 = scmp.lt.s32.totalorder %s56_s5, %s56_s5 }
  0x33   :  { %p2949_p8 = scmp.lt.s32.totalorder %s2943_s22, %s2943_s22 }
  0x35   :  { %p2950_p9 = por %p2949_p8, %p2948_p7 }
  0x37   :  { %35 = dma.hbm_to_vmem [thread:$0]  %s3469_s21, 128, %s33_s0, [#allocation6]  }
  0x38   :  { %p2951_p10 = pnand %p2950_p9, %p2944_p6 }
  0x3a   :  { %2954 = shalt.err (!%p2951_p10)
}
  0x3b   :  { %61 = dma.hbm_to_vmem [thread:$0]  %s3451_s3, 1536, %s56_s5, [#allocation8], %s3004_s27, %s3004_s27, %s3005_s28  }
  0x3c   :  { %s3010_s23 = smov [#allocation12]   ;;  %s3011_s25 = smov [#allocation15]  }
  0x3d   :  { %s87_s24 = sshll.u32 %s3010_s23, 4  ;;  %s119_s26 = sshll.u32 %s3011_s25, 4  ;;  %s88_s24 = int_to_ptr.vmem [resolvable:$true] %s87_s24  ;;  %s120_s26 = int_to_ptr.vmem [resolvable:$true] %s119_s26 }
  0x3e   :  { %s2963_s29 = scalar_lea.vmem %s88_s24, 1536  ;;  %p2968_p12 = scmp.lt.s32.totalorder %s88_s24, %s88_s24 }
  0x3f   :  { %p2964_p11 = scmp.ne.s32.totalorder %s88_s24, %s2963_s29  ;;  %p2969_p13 = scmp.lt.s32.totalorder %s2963_s29, %s2963_s29 }
  0x41   :  { %p2970_p0 = por %p2969_p13, %p2968_p12 }
  0x43   :  { %p2971_p1 = pnand %p2970_p0, %p2964_p11 }
  0x45   :  { %2974 = shalt.err (!%p2971_p1)
}
  0x46   :  { %93 = dma.hbm_to_vmem [thread:$0]  %s3457_s9, 1536, %s88_s24, [#allocation11], %s3004_s27, %s3004_s27, %s3005_s28  }
  0x47   :  { %s2983_s3 = scalar_lea.vmem %s120_s26, 1536  ;;  %p2988_p3 = scmp.lt.s32.totalorder %s120_s26, %s120_s26 }
  0x48   :  { %p2984_p2 = scmp.ne.s32.totalorder %s120_s26, %s2983_s3  ;;  %p2989_p4 = scmp.lt.s32.totalorder %s2983_s3, %s2983_s3 }
  0x4a   :  { %p2990_p5 = por %p2989_p4, %p2988_p3 }
  0x4c   :  { %p2991_p6 = pnand %p2990_p5, %p2984_p2 }
  0x4e   :  { %2994 = shalt.err (!%p2991_p6)
}
  0x4f   :  { %125 = dma.hbm_to_vmem [thread:$0]  %s3463_s15, 1536, %s120_s26, [#allocation14], %s3004_s27, %s3004_s27, %s3005_s28  }
  0x50   :  { %2995 = dma.done.wait [#allocation6], 128  }
  0x51   :  { %2996 = vsyncadd [#allocation6], 4294967168 }
  0x52   :  { %2997 = dma.done.wait [#allocation8], 14080  }
  0x53   :  { %2998 = vsyncadd [#allocation8], 4294953216 }
  0x54   :  { %2999 = dma.done.wait [#allocation11], 2048  }
  0x55   :  { %3000 = vsyncadd [#allocation11], 4294965248 }
  0x56   :  { %3001 = dma.done.wait [#allocation14], 2048  }
  0x57   :  { %3002 = vsyncadd [#allocation14], 4294965248  ;;  %v3012_v0 = vmov 0.0   ;;  %v186_v1 = vld [vmem:[#allocation7 + $0xf8] sm:$0xff]  ;;  %v185_v4 = vld [vmem:[#allocation7 + $0xf0] sm:$0xff]  ;;  %v216_v24 = vlaneseq  ;;  %vm232_vm0 = vcmask 64512  }
  0x58   :  { %305 = vmatprep.subr.mxu1 %v3012_v0  ;;  %v170_v2 = vld [vmem:[#allocation7 + $0x78] sm:$0xff]  ;;  %2477 = vmatprep.subr.mxu0 %v186_v1  ;;  %v169_v5 = vld [vmem:[#allocation7 + $0x70] sm:$0xff]  ;;  %v184_v7 = vld [vmem:[#allocation7 + $0xe8] sm:$0xff]  ;;  %v3013_v22 = vmov 1983009808   ;;  %vm150_vm1 = vcmask 253952  }
  0x59   :  { %v202_v3 = vld [vmem:[#allocation7 + $0x178] sm:$0xff]  ;;  %v201_v6 = vld [vmem:[#allocation7 + $0x170] sm:$0xff]  ;;  %2478 = vmatpush3.msra.mxu0 %v170_v2  ;;  %v200_v8 = vld [vmem:[#allocation7 + $0x168] sm:$0xff]  ;;  %v214_v23 = vunpack.c.l.s4 %v3013_v22  ;;  %v3153_v32 = vshrl.u32 %v216_v24, 7  ;;  %151 = vst.msk [vmem:[#allocation2] sm:$0x1] %vm150_vm1, %v3012_v0 }
  0x5a   :  { %306 = vmatpush1.msra.mxu1 %v202_v3  ;;  %2479 = vmatprep.subr.mxu0 %v185_v4  ;;  %v168_v9 = vld [vmem:[#allocation7 + $0x68] sm:$0xff]  ;;  %v183_v10 = vld [vmem:[#allocation7 + $0xe0] sm:$0xff]  ;;  %v182_v13 = vld [vmem:[#allocation7 + $0xd8] sm:$0xff]  ;;  %152 = vst.msk [vmem:[#allocation2 + $0x8] sm:$0x1] %vm150_vm1, %v3012_v0  ;;  %vm3014_vm2 = vmmov 0  }
  0x5b   :  { %307 = vmatprep.subr.mxu1 %v3012_v0  ;;  %2480 = vmatpush3.msra.mxu0 %v169_v5  ;;  %v199_v11 = vld [vmem:[#allocation7 + $0x160] sm:$0xff]  ;;  %v198_v14 = vld [vmem:[#allocation7 + $0x158] sm:$0xff]  ;;  %v181_v16 = vld [vmem:[#allocation7 + $0xd0] sm:$0xff]  ;;  %v215_v31 = vunpack.c.0.s8 %v214_v23  ;;  %153 = vst.msk [vmem:[#allocation2 + $0x5] sm:$0x1] %vm150_vm1, %v3012_v0  ;;  %vm647_vm3 = vcmask 261120  }
  0x5c   :  { %308 = vmatpush1.msra.mxu1 %v201_v6  ;;  %2481 = vmatprep.subr.mxu0 %v184_v7  ;;  %v167_v12 = vld [vmem:[#allocation7 + $0x60] sm:$0xff]  ;;  %v166_v15 = vld [vmem:[#allocation7 + $0x58] sm:$0xff]  ;;  %v197_v17 = vld [vmem:[#allocation7 + $0x150] sm:$0xff]  ;;  %154 = vst.msk [vmem:[#allocation2 + $0xd] sm:$0x1] %vm150_vm1, %v3012_v0  ;;  %vm1307_vm4 = vcmask 254977  }
  0x5d   :  { %309 = vmatprep.subr.mxu1 %v3012_v0  ;;  %2482 = vmatpush3.msra.mxu0 %v168_v9  ;;  %v165_v18 = vld [vmem:[#allocation7 + $0x50] sm:$0xff]  ;;  %v180_v19 = vld [vmem:[#allocation7 + $0xc8] sm:$0xff]  ;;  %v179_v25 = vld [vmem:[#allocation7 + $0xc0] sm:$0xff]  ;;  %v218_v39 = vsub.s32 %v215_v31, %v3153_v32  ;;  %1299 = vst.msk [vmem:[#allocation3] sm:$0x1] %vm150_vm1, %v3012_v0  ;;  %vm1312_vm6 = vcmask 256002  }
  0x5e   :  { %310 = vmatpush1.msra.mxu1 %v200_v8  ;;  %2483 = vmatprep.subr.mxu0 %v183_v10  ;;  %v196_v20 = vld [vmem:[#allocation7 + $0x148] sm:$0xff]  ;;  %v195_v26 = vld [vmem:[#allocation7 + $0x140] sm:$0xff]  ;;  %v178_v28 = vld [vmem:[#allocation7 + $0xb8] sm:$0xff]  ;;  %1300 = vst.msk [vmem:[#allocation3 + $0x10] sm:$0x1] %vm150_vm1, %v3012_v0  ;;  %vm1317_vm7 = vcmask 257027  }
  0x5f   :  { %311 = vmatprep.subr.mxu1 %v3012_v0  ;;  %2484 = vmatpush3.msra.mxu0 %v167_v12  ;;  %v164_v21 = vld [vmem:[#allocation7 + $0x48] sm:$0xff]  ;;  %v163_v27 = vld [vmem:[#allocation7 + $0x40] sm:$0xff]  ;;  %v194_v29 = vld [vmem:[#allocation7 + $0x138] sm:$0xff]  ;;  %1301 = vst.msk [vmem:[#allocation3 + $0x9] sm:$0x1] %vm150_vm1, %v3012_v0  ;;  %vm1688_vm8 = vcmask 1043456  }
  0x60   :  { %312 = vmatpush1.msra.mxu1 %v199_v11  ;;  %2485 = vmatprep.subr.mxu0 %v182_v13  ;;  %v162_v30 = vld [vmem:[#allocation7 + $0x38] sm:$0xff]  ;;  %v177_v33 = vld [vmem:[#allocation7 + $0xb0] sm:$0xff]  ;;  %v176_v36 = vld [vmem:[#allocation7 + $0xa8] sm:$0xff]  ;;  %1302 = vst.msk [vmem:[#allocation3 + $0x19] sm:$0x1] %vm150_vm1, %v3012_v0  ;;  %vm1684_vm9 = vcmask 31744  }
  0x61   :  { %313 = vmatprep.subr.mxu1 %v3012_v0  ;;  %2486 = vmatpush3.msra.mxu0 %v166_v15  ;;  %v193_v34 = vld [vmem:[#allocation7 + $0x130] sm:$0xff]  ;;  %v192_v37 = vld [vmem:[#allocation7 + $0x128] sm:$0xff]  ;;  %v175_v40 = vld [vmem:[#allocation7 + $0xa0] sm:$0xff]  ;;  %2022 = vst.msk [vmem:[#allocation4] sm:$0x1] %vm150_vm1, %v3012_v0  ;;  %vm2042_vm10 = vcmask 258052  }
  0x62   :  { %314 = vmatpush1.msra.mxu1 %v198_v14  ;;  %2487 = vmatprep.subr.mxu0 %v181_v16  ;;  %v161_v35 = vld [vmem:[#allocation7 + $0x30] sm:$0xff]  ;;  %v160_v38 = vld [vmem:[#allocation7 + $0x28] sm:$0xff]  ;;  %v191_v41 = vld [vmem:[#allocation7 + $0x120] sm:$0xff]  ;;  %2023 = vst.msk [vmem:[#allocation4 + $0x18] sm:$0x1] %vm150_vm1, %v3012_v0  ;;  %vm2047_vm11 = vcmask 259077  }
  0x63   :  { %315 = vmatprep.subr.mxu1 %v3012_v0  ;;  %2488 = vmatpush3.msra.mxu0 %v165_v18  ;;  %v149_v42 = vld [vmem:[#allocation5] sm:$0xff]  ;;  %v159_v43 = vld [vmem:[#allocation7 + $0x20] sm:$0xff]  ;;  %v173_v49 = vld [vmem:[#allocation7 + $0x90] sm:$0xff]  ;;  %2024 = vst.msk [vmem:[#allocation4 + $0x11] sm:$0x1] %vm150_vm1, %v3012_v0  ;;  %vm2052_vm12 = vcmask 260102  }
  0x64   :  { %316 = vmatpush1.msra.mxu1 %v197_v17  ;;  %2489 = vmatprep.subr.mxu0 %v180_v19  ;;  %v174_v44 = vld [vmem:[#allocation7 + $0x98] sm:$0xff]  ;;  %v3160_v47 = vrot.slane %v149_v42, %v218_v39  ;;  %v212_v48 = vcombine.high %v149_v42, %v149_v42  ;;  %v189_v50 = vld [vmem:[#allocation7 + $0x110] sm:$0xff]  ;;  %v172_v52 = vld [vmem:[#allocation7 + $0x88] sm:$0xff]  ;;  %2025 = vst.msk [vmem:[#allocation4 + $0x29] sm:$0x1] %vm150_vm1, %v3012_v0  ;;  %vm2057_vm13 = vcmask 261127  }
  0x65   :  { %317 = vmatprep.subr.mxu1 %v3012_v0  ;;  %2490 = vmatpush3.msra.mxu0 %v164_v21  ;;  %v190_v45 = vld [vmem:[#allocation7 + $0x118] sm:$0xff]  ;;  %v157_v51 = vld [vmem:[#allocation7 + $0x10] sm:$0xff]  ;;  %v188_v53 = vld [vmem:[#allocation7 + $0x108] sm:$0xff] }
  0x66   :  { %318 = vmatpush1.msra.mxu1 %v196_v20  ;;  %2491 = vmatprep.subr.mxu0 %v179_v25  ;;  %v158_v46 = vld [vmem:[#allocation7 + $0x18] sm:$0xff]  ;;  %v156_v54 = vld [vmem:[#allocation7 + $0x8] sm:$0xff]  ;;  %v3166_v55 = vcombine.high %v3160_v47, %v3160_v47  ;;  %v3168_v56 = vrot.slane %v212_v48, %v218_v39  ;;  %v171_v57 = vld [vmem:[#allocation7 + $0x80] sm:$0xff] }
  0x67   :  { %319 = vmatprep.subr.mxu1 %v3012_v0  ;;  %2492 = vmatpush3.msra.mxu0 %v163_v27  ;;  %v155_v58 = vld [vmem:[#allocation7] sm:$0xff]  ;;  %v435_v1 = vld [vmem:[#allocation7 + $0x278] sm:$0xff]  ;;  %v434_v4 = vld [vmem:[#allocation7 + $0x270] sm:$0xff] }
  0x68   :  { %320 = vmatpush1.msra.mxu1 %v195_v26  ;;  %2493 = vmatprep.subr.mxu0 %v178_v28  ;;  %v187_v59 = vld [vmem:[#allocation7 + $0x100] sm:$0xff]  ;;  %v3175_v62 = vcombine.high %v3168_v56, %v3168_v56  ;;  %v419_v2 = vld [vmem:[#allocation7 + $0x1f8] sm:$0xff]  ;;  %v418_v5 = vld [vmem:[#allocation7 + $0x1f0] sm:$0xff] }
  0x69   :  { %321 = vmatprep.subr.mxu1 %v3012_v0  ;;  %2494 = vmatpush3.msra.mxu0 %v162_v30  ;;  %v436_v60 = vld [vmem:[#allocation7 + $0x280] sm:$0xff]  ;;  %v451_v6 = vld [vmem:[#allocation7 + $0x2f8] sm:$0xff]  ;;  %v433_v7 = vld [vmem:[#allocation7 + $0x268] sm:$0xff] }
  0x6a   :  { %322 = vmatpush1.msra.mxu1 %v194_v29  ;;  %2495 = vmatprep.subr.mxu0 %v177_v33  ;;  %v203_v61 = vld [vmem:[#allocation7 + $0x180] sm:$0xff]  ;;  %v417_v8 = vld [vmem:[#allocation7 + $0x1e8] sm:$0xff]  ;;  %v450_v9 = vld [vmem:[#allocation7 + $0x2f0] sm:$0xff] }
  0x6b   :  { %323 = vmatprep.subr.mxu1 %v3012_v0  ;;  %2496 = vmatpush3.msra.mxu0 %v161_v35  ;;  %v420_v63 = vld [vmem:[#allocation7 + $0x200] sm:$0xff]  ;;  %v449_v12 = vld [vmem:[#allocation7 + $0x2e8] sm:$0xff]  ;;  %v431_v13 = vld [vmem:[#allocation7 + $0x258] sm:$0xff] }
  0x6c   :  { %324 = vmatpush1.msra.mxu1 %v193_v34  ;;  %2497 = vmatprep.subr.mxu0 %v176_v36  ;;  %v452_v3 = vld [vmem:[#allocation7 + $0x300] sm:$0xff]  ;;  %v415_v14 = vld [vmem:[#allocation7 + $0x1d8] sm:$0xff]  ;;  %v430_v16 = vld [vmem:[#allocation7 + $0x250] sm:$0xff] }
  0x6d   :  { %325 = vmatprep.subr.mxu1 %v3012_v0  ;;  %2498 = vmatpush3.msra.mxu0 %v160_v38  ;;  %v432_v10 = vld [vmem:[#allocation7 + $0x260] sm:$0xff]  ;;  %v414_v17 = vld [vmem:[#allocation7 + $0x1d0] sm:$0xff]  ;;  %v447_v18 = vld [vmem:[#allocation7 + $0x2d8] sm:$0xff] }
  0x6e   :  { %326 = vmatpush1.msra.mxu1 %v192_v37  ;;  %2499 = vmatprep.subr.mxu0 %v175_v40  ;;  %v416_v11 = vld [vmem:[#allocation7 + $0x1e0] sm:$0xff]  ;;  %v429_v19 = vld [vmem:[#allocation7 + $0x248] sm:$0xff]  ;;  %v446_v21 = vld [vmem:[#allocation7 + $0x2d0] sm:$0xff] }
  0x6f   :  { %327 = vmatprep.subr.mxu1 %v3012_v0  ;;  %2500 = vmatpush3.msra.mxu0 %v159_v43  ;;  %v448_v15 = vld [vmem:[#allocation7 + $0x2e0] sm:$0xff]  ;;  %v413_v20 = vld [vmem:[#allocation7 + $0x1c8] sm:$0xff]  ;;  %v427_v25 = vld [vmem:[#allocation7 + $0x238] sm:$0xff] }
  0x70   :  { %328 = vmatpush1.msra.mxu1 %v191_v41  ;;  %2501 = vmatprep.subr.mxu0 %v174_v44  ;;  %v428_v22 = vld [vmem:[#allocation7 + $0x240] sm:$0xff]  ;;  %v445_v24 = vld [vmem:[#allocation7 + $0x2c8] sm:$0xff]  ;;  %v411_v26 = vld [vmem:[#allocation7 + $0x1b8] sm:$0xff] }
  0x71   :  { %329 = vmatprep.subr.mxu1 %v3012_v0  ;;  %2502 = vmatpush3.msra.mxu0 %v158_v46  ;;  %v412_v23 = vld [vmem:[#allocation7 + $0x1c0] sm:$0xff]  ;;  %v426_v28 = vld [vmem:[#allocation7 + $0x230] sm:$0xff]  ;;  %v443_v30 = vld [vmem:[#allocation7 + $0x2b8] sm:$0xff] }
  0x72   :  { %330 = vmatpush1.msra.mxu1 %v190_v45  ;;  %2503 = vmatprep.subr.mxu0 %v173_v49  ;;  %v444_v27 = vld [vmem:[#allocation7 + $0x2c0] sm:$0xff]  ;;  %v410_v29 = vld [vmem:[#allocation7 + $0x1b0] sm:$0xff]  ;;  %v425_v31 = vld [vmem:[#allocation7 + $0x228] sm:$0xff] }
  0x73   :  { %331 = vmatprep.subr.mxu1 %v3012_v0  ;;  %2504 = vmatpush3.msra.mxu0 %v157_v51  ;;  %v409_v33 = vld [vmem:[#allocation7 + $0x1a8] sm:$0xff]  ;;  %v442_v34 = vld [vmem:[#allocation7 + $0x2b0] sm:$0xff]  ;;  %v424_v35 = vld [vmem:[#allocation7 + $0x220] sm:$0xff] }
  0x74   :  { %332 = vmatpush1.msra.mxu1 %v189_v50  ;;  %2505 = vmatprep.subr.mxu0 %v172_v52  ;;  %v408_v36 = vld [vmem:[#allocation7 + $0x1a0] sm:$0xff]  ;;  %v441_v37 = vld [vmem:[#allocation7 + $0x2a8] sm:$0xff]  ;;  %v423_v38 = vld [vmem:[#allocation7 + $0x218] sm:$0xff] }
  0x75   :  { %333 = vmatprep.subr.mxu1 %v3012_v0  ;;  %2506 = vmatpush3.msra.mxu0 %v156_v54  ;;  %v407_v39 = vld [vmem:[#allocation7 + $0x198] sm:$0xff]  ;;  %v440_v40 = vld [vmem:[#allocation7 + $0x2a0] sm:$0xff]  ;;  %v422_v41 = vld [vmem:[#allocation7 + $0x210] sm:$0xff] }
  0x76   :  { %334 = vmatpush1.msra.mxu1 %v188_v53  ;;  %2507 = vmatprep.subr.mxu0 %v171_v57  ;;  %v406_v42 = vld [vmem:[#allocation7 + $0x190] sm:$0xff]  ;;  %v439_v43 = vld [vmem:[#allocation7 + $0x298] sm:$0xff]  ;;  %v421_v44 = vld [vmem:[#allocation7 + $0x208] sm:$0xff]  ;;  %v3015_v57 = vmov 1966171168  }
  0x77   :  { %335 = vmatprep.subr.mxu1 %v3012_v0  ;;  %299 = vmatprep.mubr.f32.mxu0 %v3166_v55  ;;  %v405_v45 = vld [vmem:[#allocation7 + $0x188] sm:$0xff]  ;;  %v438_v46 = vld [vmem:[#allocation7 + $0x290] sm:$0xff]  ;;  %v642_v51 = vld [vmem:[#allocation9 + $0x30] sm:$0xff] }
  0x78   :  { %2508 = vmatpush3.msra.mxu0 %v155_v58  ;;  %336 = vmatpush1.msra.mxu1 %v187_v59  ;;  %v437_v48 = vld [vmem:[#allocation7 + $0x288] sm:$0xff]  ;;  %v635_v52 = vld [vmem:[#allocation9 + $0x10] sm:$0xff]  ;;  %v641_v53 = vld [vmem:[#allocation9 + $0x28] sm:$0xff]  ;;  %v377_v58 = vunpack.c.l.s4 %v3015_v57 }
  0x79   :  { %300 = vmatmul.mubr.f32.vlgmr.msra.gmra.mxu0 %v3160_v47  ;;  %367 = vmatprep.subr.mxu1 %v3012_v0  ;;  %v453_v49 = vld [vmem:[#allocation7 + $0x308] sm:$0xff]  ;;  %v634_v54 = vld [vmem:[#allocation9 + $0x8] sm:$0xff] }
  0x7a   :  { %2512 = vmatprep.subr.mxu0 %v436_v60  ;;  %368 = vmatpush2.msra.mxu1 %v203_v61  ;;  %v636_v50 = vld [vmem:[#allocation9 + $0x18] sm:$0xff]  ;;  %v378_v60 = vunpack.c.0.s8 %v377_v58 }
  0x7b   :  { %2513 = vmatpush3.msra.mxu0 %v420_v63  ;;  %2432 = vmatprep.mubr.msk.f32.mxu1 %vm232_vm0, %v3175_v62 }
  0x7c   :  { %2514 = vmatprep.subr.mxu0 %v435_v1  ;;  %532 = vmatprep.subr.mxu1 %v3012_v0 }
  0x7d   :  { %370 = vmatmul.mubr.f32.vlgmr.msra.gmra.mxu1 %v3168_v56  ;;  %2515 = vmatpush3.msra.mxu0 %v419_v2  ;;  %v381_v2 = vsub.s32 %v378_v60, %v3153_v32 }
  0x7e   :  { %533 = vmatpush1.msra.mxu1 %v452_v3  ;;  %2516 = vmatprep.subr.mxu0 %v434_v4 }
  0x7f   :  { %534 = vmatprep.subr.mxu1 %v3012_v0  ;;  %2517 = vmatpush3.msra.mxu0 %v418_v5 }
  0x80   :  { %535 = vmatpush1.msra.mxu1 %v451_v6  ;;  %2518 = vmatprep.subr.mxu0 %v433_v7 }
  0x81   :  { %536 = vmatprep.subr.mxu1 %v3012_v0  ;;  %2519 = vmatpush3.msra.mxu0 %v417_v8 }
  0x82   :  { %537 = vmatpush1.msra.mxu1 %v450_v9  ;;  %2520 = vmatprep.subr.mxu0 %v432_v10 }
  0x83   :  { %538 = vmatprep.subr.mxu1 %v3012_v0  ;;  %2521 = vmatpush3.msra.mxu0 %v416_v11 }
  0x84   :  { %539 = vmatpush1.msra.mxu1 %v449_v12  ;;  %2522 = vmatprep.subr.mxu0 %v431_v13  ;;  %v2434_v12 = vld [vmem:[%s3450_s2 + $0x1] ss:$0 sm:$0xff] }
  0x85   :  { %540 = vmatprep.subr.mxu1 %v3012_v0  ;;  %2523 = vmatpush3.msra.mxu0 %v415_v14 }
  0x86   :  { %541 = vmatpush1.msra.mxu1 %v448_v15  ;;  %2524 = vmatprep.subr.mxu0 %v430_v16 }
  0x87   :  { %542 = vmatprep.subr.mxu1 %v3012_v0  ;;  %2525 = vmatpush3.msra.mxu0 %v414_v17 }
  0x88   :  { %543 = vmatpush1.msra.mxu1 %v447_v18  ;;  %2526 = vmatprep.subr.mxu0 %v429_v19 }
  0x89   :  { %544 = vmatprep.subr.mxu1 %v3012_v0  ;;  %2527 = vmatpush3.msra.mxu0 %v413_v20 }
  0x8a   :  { %545 = vmatpush1.msra.mxu1 %v446_v21  ;;  %2528 = vmatprep.subr.mxu0 %v428_v22  ;;  %v801_v22 = vld [vmem:[#allocation9 + $0x58] sm:$0xff] }
  0x8b   :  { %546 = vmatprep.subr.mxu1 %v3012_v0  ;;  %2529 = vmatpush3.msra.mxu0 %v412_v23 }
  0x8c   :  { %547 = vmatpush1.msra.mxu1 %v445_v24  ;;  %2530 = vmatprep.subr.mxu0 %v427_v25  ;;  %v800_v25 = vld [vmem:[#allocation9 + $0x50] sm:$0xff] }
  0x8d   :  { %548 = vmatprep.subr.mxu1 %v3012_v0  ;;  %2531 = vmatpush3.msra.mxu0 %v411_v26  ;;  %v799_v26 = vld [vmem:[#allocation9 + $0x48] sm:$0xff] }
  0x8e   :  { %549 = vmatpush1.msra.mxu1 %v444_v27  ;;  %2532 = vmatprep.subr.mxu0 %v426_v28  ;;  %v798_v27 = vld [vmem:[#allocation9 + $0x40] sm:$0xff] }
  0x8f   :  { %550 = vmatprep.subr.mxu1 %v3012_v0  ;;  %2533 = vmatpush3.msra.mxu0 %v410_v29  ;;  %v896_v29 = vld [vmem:[#allocation10 + $0x18] sm:$0xff] }
  0x90   :  { %551 = vmatpush1.msra.mxu1 %v443_v30  ;;  %2534 = vmatprep.subr.mxu0 %v425_v31  ;;  %v895_v30 = vld [vmem:[#allocation10 + $0x10] sm:$0xff]  ;;  %v894_v31 = vld [vmem:[#allocation10 + $0x8] sm:$0xff] }
  0x91   :  { %552 = vmatprep.subr.mxu1 %v3012_v0  ;;  %2535 = vmatpush3.msra.mxu0 %v409_v33  ;;  %v893_v33 = vld [vmem:[#allocation10] sm:$0xff] }
  0x92   :  { %553 = vmatpush1.msra.mxu1 %v442_v34  ;;  %2536 = vmatprep.subr.mxu0 %v424_v35  ;;  %v971_v34 = vld [vmem:[%s3454_s6] sm:$0xff] }
  0x93   :  { %554 = vmatprep.subr.mxu1 %v3012_v0  ;;  %2537 = vmatpush3.msra.mxu0 %v408_v36 }
  0x94   :  { %555 = vmatpush1.msra.mxu1 %v441_v37  ;;  %2538 = vmatprep.subr.mxu0 %v423_v38 }
  0x95   :  { %556 = vmatprep.subr.mxu1 %v3012_v0  ;;  %2539 = vmatpush3.msra.mxu0 %v407_v39 }
  0x96   :  { %557 = vmatpush1.msra.mxu1 %v440_v40  ;;  %2540 = vmatprep.subr.mxu0 %v422_v41  ;;  %v2439_v41 = vld [vmem:[%s3452_s4] ss:$0 sm:$0xff] }
  0x97   :  { %558 = vmatprep.subr.mxu1 %v3012_v0  ;;  %2541 = vmatpush3.msra.mxu0 %v406_v42 }
  0x98   :  { %559 = vmatpush1.msra.mxu1 %v439_v43  ;;  %2542 = vmatprep.subr.mxu0 %v421_v44 }
  0x99   :  { %560 = vmatprep.subr.mxu1 %v3012_v0  ;;  %2543 = vmatpush3.msra.mxu0 %v405_v45 }
  0x9a   :  { %526 = vmatprep.mubr.f32.mxu0 %v3166_v55  ;;  %561 = vmatpush1.msra.mxu1 %v438_v46  ;;  %v640_v55 = vld [vmem:[#allocation9 + $0x20] sm:$0xff] }
  0x9b   :  { %527 = vmatmul.mubr.f32.vlgmr.msra.gmra.mxu0 %v3160_v47  ;;  %562 = vmatprep.subr.mxu1 %v3012_v0  ;;  %v643_v47 = vld [vmem:[#allocation9 + $0x38] sm:$0xff] }
  0x9c   :  { %563 = vmatpush1.msra.mxu1 %v437_v48  ;;  %2435 = vmatprep.mubr.msk.f32.mxu1 %vm232_vm0, %v3175_v62  ;;  %v2431_v62 = vld [vmem:[%s3450_s2] ss:$0 sm:$0xff] }
  0x9d   :  { %594 = vmatprep.subr.mxu1 %v3012_v0  ;;  %2636 = vmatprep.subr.mxu0 %v3012_v0 }
  0x9e   :  { %595 = vmatpush2.msra.mxu1 %v453_v49  ;;  %2637 = vmatpush3.msra.mxu0 %v643_v47 }
  0x9f   :  { %597 = vmatmul.mubr.f32.vlgmr.msra.gmra.mxu1 %v3168_v56  ;;  %2647 = vmatprep.subr.mxu1 %v3012_v0  ;;  %v633_v56 = vld [vmem:[#allocation9] sm:$0xff] }
  0xa0   :  { %2648 = vmatpush3.msra.mxu1 %v636_v50  ;;  %2638 = vmatprep.subr.mxu0 %v3012_v0 }
  0xa1   :  { %2649 = vmatprep.subr.mxu1 %v3012_v0  ;;  %2639 = vmatpush3.msra.mxu0 %v642_v51 }
  0xa2   :  { %2650 = vmatpush3.msra.mxu1 %v635_v52  ;;  %2640 = vmatprep.subr.mxu0 %v3012_v0 }
  0xa3   :  { %2651 = vmatprep.subr.mxu1 %v3012_v0  ;;  %2641 = vmatpush3.msra.mxu0 %v641_v53 }
  0xa4   :  { %2652 = vmatpush3.msra.mxu1 %v634_v54  ;;  %2642 = vmatprep.subr.mxu0 %v3012_v0 }
  0xa5   :  { %2653 = vmatprep.subr.mxu1 %v3012_v0  ;;  %2643 = vmatpush3.msra.mxu0 %v640_v55  ;;  %v3293_v55 = vsub.s32 0, %v3153_v32 }
  0xa6   :  { %2644 = vmatprep.mubr.msk.f32.mxu0 %vm3014_vm2, %v3012_v0  ;;  %2654 = vmatpush3.msra.mxu1 %v633_v56 }
  0xa7   :  { %2655 = vmatprep.mubr.msk.f32.mxu1 %vm3014_vm2, %v3012_v0  ;;  %2658 = vmatprep.subr.mxu0 %v3012_v0 }
  0xa8   :  { %2669 = vmatprep.subr.mxu1 %v3012_v0 }
 0x139   :  { %v2509_v59 = vpop.f32.mrf.mxu0 }
 0x13b   :  { %v2510_v61 = vpop.f32.mrf.mxu0 }
 0x13c   :  { %v2511_v63 = vadd.f32 %v2510_v61, %v2509_v59 }
 0x13d   :  { %v371_v1 = vpop.f32.mrf.mxu1 }
 0x13e   :  { %v302_v3 = vadd.f32 %v2511_v63, %v2431_v62 }
 0x13f   :  { %v373_v4 = vpop.f32.mrf.mxu1 }
 0x140   :  { %v372_v5 = vadd.f32 %v371_v1, %v302_v3 }
 0x142   :  { %v382_v6 = vrot.slane %v372_v5, %v381_v2 }
 0x144   :  { %v383_v7 = vcombine.high %v382_v6, %v382_v6  ;;  %v390_v8 = vrot.slane %v382_v6, %v381_v2 }
 0x146   :  { %v397_v9 = vrot.slane %v383_v7, %v381_v2  ;;  %400 = vst.msk [vmem:[#allocation2 + $0x1] sm:$0x1] %vm150_vm1, %v390_v8  ;;  %402 = vst.msk [vmem:[#allocation2 + $0x2] sm:$0x1] %vm150_vm1, %v390_v8  ;;  %v1132_v8 = vld [vmem:[%s3455_s7] sm:$0x1] }
 0x148   :  { %401 = vst.msk [vmem:[#allocation2 + $0x9] sm:$0x1] %vm150_vm1, %v397_v9  ;;  %403 = vst.msk [vmem:[#allocation2 + $0xa] sm:$0x1] %vm150_vm1, %v397_v9 }
 0x15b   :  { %v2544_v10 = vpop.f32.mrf.mxu0 }
 0x15d   :  { %v2545_v11 = vpop.f32.mrf.mxu0 }
 0x15e   :  { %v2546_v13 = vadd.f32 %v2545_v11, %v2544_v10  ;;  %v1214_v11 = vld [vmem:[%s3456_s8] sm:$0x1] }
 0x15f   :  { %v598_v14 = vpop.f32.mrf.mxu1 }
 0x160   :  { %v529_v15 = vadd.f32 %v2546_v13, %v2434_v12  ;;  %v1334_v12 = vld [vmem:[#allocation12 + $0x38] sm:$0xff] }
 0x161   :  { %v600_v16 = vpop.f32.mrf.mxu1  ;;  %v1327_v13 = vld [vmem:[#allocation12 + $0x18] sm:$0xff] }
 0x162   :  { %v599_v17 = vadd.f32 %v598_v14, %v529_v15  ;;  %v1333_v14 = vld [vmem:[#allocation12 + $0x30] sm:$0xff]  ;;  %v1332_v16 = vld [vmem:[#allocation12 + $0x28] sm:$0xff] }
 0x163   :  { %v1326_v15 = vld [vmem:[#allocation12 + $0x10] sm:$0xff] }
 0x164   :  { %v609_v18 = vrot.slane %v599_v17, %v381_v2  ;;  %v1325_v17 = vld [vmem:[#allocation12 + $0x8] sm:$0xff] }
 0x166   :  { %v610_v19 = vcombine.high %v609_v18, %v609_v18  ;;  %v617_v20 = vrot.slane %v609_v18, %v381_v2  ;;  %v1331_v18 = vld [vmem:[#allocation12 + $0x20] sm:$0xff] }
 0x168   :  { %v624_v21 = vrot.slane %v610_v19, %v381_v2  ;;  %627 = vst.msk [vmem:[#allocation2 + $0x3] sm:$0x1] %vm150_vm1, %v617_v20  ;;  %629 = vst.msk [vmem:[#allocation2 + $0x4] sm:$0x1] %vm150_vm1, %v617_v20  ;;  %v1324_v19 = vld [vmem:[#allocation12] sm:$0xff]  ;;  %v1503_v20 = vld [vmem:[#allocation12 + $0x58] sm:$0xff] }
 0x16a   :  { %628 = vst.msk [vmem:[#allocation2 + $0xb] sm:$0x1] %vm150_vm1, %v624_v21  ;;  %630 = vst.msk [vmem:[#allocation2 + $0xc] sm:$0x1] %vm150_vm1, %v624_v21 }
 0x171   :  { %v2832_v23 = vld [vmem:[#allocation2 + $0x1] ss:$8 sps:$4 sm:$0xff]  }
 0x172   :  { %v2833_v24 = vld [vmem:[#allocation2] ss:$8 sps:$4 sm:$0xff]   ;;  %2645 = vmatmul.mubr.msk.f32.vlgmr.msra.gmra.mxu0 %vm647_vm3, %v2832_v23 }
 0x173   :  { %2656 = vmatmul.mubr.msk.f32.vlgmr.msra.gmra.mxu1 %vm647_vm3, %v2833_v24  ;;  %2659 = vmatpush3.msra.mxu0 %v801_v22  ;;  %v2834_v28 = vld [vmem:[#allocation2 + $0x2] ss:$8 sps:$4 sm:$0xff]  }
 0x174   :  { %2660 = vmatprep.subr.mxu0 %v3012_v0  ;;  %2666 = vmatprep.mubr.msk.f32.mxu0 %vm3014_vm2, %v3012_v0 }
 0x175   :  { %2661 = vmatpush3.msra.mxu0 %v800_v25  ;;  %2677 = vmatprep.mubr.msk.f32.mxu1 %vm3014_vm2, %v3012_v0 }
 0x176   :  { %2662 = vmatprep.subr.mxu0 %v3012_v0  ;;  %2670 = vmatpush3.msra.mxu1 %v896_v29 }
 0x177   :  { %2663 = vmatpush3.msra.mxu0 %v799_v26  ;;  %2671 = vmatprep.subr.mxu1 %v3012_v0 }
 0x178   :  { %2664 = vmatprep.subr.mxu0 %v3012_v0  ;;  %2672 = vmatpush3.msra.mxu1 %v895_v30 }
 0x179   :  { %2665 = vmatpush3.msra.mxu0 %v798_v27  ;;  %2673 = vmatprep.subr.mxu1 %v3012_v0 }
 0x17a   :  { %2667 = vmatmul.mubr.msk.f32.vlgmr.msra.gmra.mxu0 %vm647_vm3, %v2834_v28  ;;  %2680 = vmatprep.subr.mxu0 %v3012_v0 }
 0x17b   :  { %2682 = vmatprep.mubr.msk.f32.mxu0 %vm3014_vm2, %v3012_v0  ;;  %2674 = vmatpush3.msra.mxu1 %v894_v31 }
 0x17c   :  { %2675 = vmatprep.subr.mxu1 %v3012_v0  ;;  %2681 = vmatpush3.msra.mxu0 %v971_v34 }
 0x17d   :  { %2676 = vmatpush3.msra.mxu1 %v893_v33  ;;  %2685 = vmatprep.subr.mxu0 %v3012_v0 }
 0x17e   :  { %2696 = vmatprep.subr.mxu1 %v3012_v0 }
 0x232   :  { %v716_v35 = vpop.f32.mrf.mxu0 }
 0x233   :  { %v791_v36 = vpop.f32.mrf.mxu1 }
 0x234   :  { %v2646_v37 = vpop.f32.mrf.mxu0  ;;  %v792_v39 = vadd.f32 %v791_v36, %v716_v35 }
 0x235   :  { %v2657_v38 = vpop.f32.mrf.mxu1  ;;  %v1502_v37 = vld [vmem:[#allocation12 + $0x50] sm:$0xff] }
 0x23a   :  { %v873_v40 = vpop.f32.mrf.mxu0 }
 0x23b   :  { %v877_v42 = vadd.f32 %v873_v40, %v792_v39  ;;  %v1501_v39 = vld [vmem:[#allocation12 + $0x48] sm:$0xff]  ;;  %v1500_v40 = vld [vmem:[#allocation12 + $0x40] sm:$0xff] }
 0x23c   :  { %v2668_v43 = vpop.f32.mrf.mxu0 }
 0x23d   :  { %v885_v44 = vadd.f32 %v2439_v41, %v877_v42  ;;  %v1608_v42 = vld [vmem:[#allocation13 + $0x18] sm:$0xff]  ;;  %v1607_v43 = vld [vmem:[#allocation13 + $0x10] sm:$0xff] }
 0x23f   :  { %v886_v45 = vsel %vm647_vm3, %v885_v44, 0.0 }
 0x240   :  { %v887_v46 = vrot.slane %v886_v45, 4 }
 0x242   :  { %v888_v48 = vadd.f32 %v887_v46, %v886_v45  ;;  %v1605_v45 = vld [vmem:[#allocation13] sm:$0xff]  ;;  %v3344_v46 = vld [vmem:[%s3460_s12] sm:$0xf] }
 0x244   :  { %v889_v49 = vrot.slane %v888_v48, 2 }
 0x246   :  { %v890_v47 = vadd.f32 %v889_v49, %v888_v48 }
 0x248   :  { %v891_v50 = vrot.slane %v890_v47, 1 }
 0x24a   :  { %v892_v51 = vadd.f32 %v891_v50, %v890_v47 }
 0x24c   :  { %2678 = vmatmul.mubr.msk.f32.vlgmr.msra.gmra.mxu1 %vm647_vm3, %v892_v51 }
 0x24d   :  { %2697 = vmatpush3.msra.mxu1 %v971_v34  ;;  %2698 = vmatprep.mubr.msk.f32.mxu1 %vm3014_vm2, %v3012_v0 }
 0x24e   :  { %2701 = vmatprep.subr.mxu1 %v3012_v0 }
 0x30c   :  { %v966_v52 = vpop.f32.mrf.mxu1 }
 0x30d   :  { %v970_v53 = vmul.f32 0.03125, %v966_v52 }
 0x30e   :  { %v2679_v54 = vpop.f32.mrf.mxu1 }
 0x30f   :  { %2683 = vmatmul.mubr.msk.f32.vlgmr.msra.gmra.mxu0 %vm232_vm0, %v970_v53  ;;  %v2451_v53 = vld [vmem:[%s3458_s10] ss:$0 sm:$0xff] }
 0x310   :  { %2686 = vmatpush3.msra.mxu0 %v896_v29  ;;  %2693 = vmatprep.mubr.msk.f32.mxu0 %vm3014_vm2, %v3012_v0 }
 0x311   :  { %2687 = vmatprep.subr.mxu0 %v3012_v0 }
 0x312   :  { %2688 = vmatpush3.msra.mxu0 %v895_v30 }
 0x313   :  { %2689 = vmatprep.subr.mxu0 %v3012_v0 }
 0x314   :  { %2690 = vmatpush3.msra.mxu0 %v894_v31 }
 0x315   :  { %2691 = vmatprep.subr.mxu0 %v3012_v0 }
 0x316   :  { %2692 = vmatpush3.msra.mxu0 %v893_v33 }
 0x317   :  { %2706 = vmatprep.subr.mxu0 %v1334_v12 }
 0x3cf   :  { %v1041_v56 = vpop.f32.mrf.mxu0 }
 0x3d0   :  { %v1048_v57 = vrot.slane %v1041_v56, %v3293_v55 }
 0x3d1   :  { %v2684_v58 = vpop.f32.mrf.mxu0 }
 0x3d2   :  { %v1049_v59 = vsub.f32 %v885_v44, %v1048_v57  ;;  %v1606_v44 = vld [vmem:[#allocation13 + $0x8] sm:$0xff] }
 0x3d4   :  { %v1050_v60 = vmul.f32 %v1049_v59, %v1049_v59 }
 0x3d6   :  { %v1051_v61 = vsel %vm647_vm3, %v1050_v60, 0.0 }
 0x3d7   :  { %v1052_v62 = vrot.slane %v1051_v61, 4 }
 0x3d9   :  { %v1053_v63 = vadd.f32 %v1052_v62, %v1051_v61 }
 0x3db   :  { %v1054_v1 = vrot.slane %v1053_v63, 2 }
 0x3dd   :  { %v1055_v2 = vadd.f32 %v1054_v1, %v1053_v63 }
 0x3df   :  { %v1056_v3 = vrot.slane %v1055_v2, 1 }
 0x3e1   :  { %v1057_v4 = vadd.f32 %v1056_v3, %v1055_v2 }
 0x3e3   :  { %2694 = vmatmul.mubr.msk.f32.vlgmr.msra.gmra.mxu0 %vm647_vm3, %v1057_v4 }
 0x3e4   :  { %2707 = vmatpush3.msra.mxu0 %v1334_v12 }
 0x3e5   :  { %2708 = vmatprep.subr.mxu0 %v1333_v14 }
 0x3e6   :  { %2709 = vmatpush3.msra.mxu0 %v1333_v14 }
 0x3e7   :  { %2710 = vmatprep.subr.mxu0 %v1332_v16 }
 0x3e8   :  { %2711 = vmatpush3.msra.mxu0 %v1332_v16 }
 0x3e9   :  { %2712 = vmatprep.subr.mxu0 %v1331_v18 }
 0x3ea   :  { %2713 = vmatpush3.msra.mxu0 %v1331_v18 }
 0x3eb   :  { %2728 = vmatprep.subr.mxu0 %v1503_v20 }
 0x4a3   :  { %v1127_v5 = vpop.f32.mrf.mxu0 }
 0x4a4   :  { %v1131_v6 = vmul.f32 0.03125, %v1127_v5 }
 0x4a5   :  { %v2695_v32 = vpop.f32.mrf.mxu0 }
 0x4a6   :  { %v1133_v7 = vadd.f32 1e-05, %v1131_v6 }
 0x4a8   :  { %2835 = vrsqrt.f32 %v1133_v7 }
 0x4b5   :  { %v2836_v9 = vpop.eup %2835 }
 0x4b6   :  { %v1135_v10 = vmul.f32 %v2836_v9, %v1132_v8 }
 0x4b8   :  { %2699 = vmatmul.mubr.msk.f32.vlgmr.msra.gmra.mxu1 %vm232_vm0, %v1135_v10 }
 0x4b9   :  { %2702 = vmatpush3.msra.mxu1 %v971_v34  ;;  %2703 = vmatprep.mubr.msk.f32.mxu1 %vm3014_vm2, %v3012_v0 }
 0x4ba   :  { %2717 = vmatprep.subr.mxu1 %v1327_v13 }
 0x4bc   :  { %2704 = vmatmul.mubr.msk.f32.vlgmr.msra.gmra.mxu1 %vm232_vm0, %v1214_v11  ;;  %vm2418_vm0 = vcmask 523264  }
 0x4bd   :  { %2718 = vmatpush3.msra.mxu1 %v1327_v13 }
 0x4be   :  { %2719 = vmatprep.subr.mxu1 %v1326_v15 }
 0x4bf   :  { %2720 = vmatpush3.msra.mxu1 %v1326_v15 }
 0x4c0   :  { %2721 = vmatprep.subr.mxu1 %v1325_v17 }
 0x4c1   :  { %2722 = vmatpush3.msra.mxu1 %v1325_v17 }
 0x4c2   :  { %2723 = vmatprep.subr.mxu1 %v1324_v19 }
 0x4c3   :  { %2724 = vmatpush3.msra.mxu1 %v1324_v19 }
 0x4c4   :  { %2739 = vmatprep.subr.mxu1 %v3012_v0 }
 0x578   :  { %v1205_v21 = vpop.f32.mrf.mxu1 }
 0x579   :  { %v1212_v22 = vrot.slane %v1205_v21, %v3293_v55 }
 0x57a   :  { %v2700_v23 = vpop.f32.mrf.mxu1 }
 0x57b   :  { %v1213_v25 = vmul.f32 %v1212_v22, %v1049_v59 }
 0x57c   :  { %v1284_v24 = vpop.f32.mrf.mxu1 }
 0x57d   :  { %v1291_v26 = vrot.slane %v1284_v24, %v3293_v55 }
 0x57e   :  { %v2705_v27 = vpop.f32.mrf.mxu1 }
 0x57f   :  { %v1292_v28 = vadd.f32 %v1291_v26, %v1213_v25 }
 0x581   :  { %vm1293_vm5 = vcmp.gt.f32.partialorder %v1292_v28, 0.0  ;;  %v1294_v29 = vmul.f32 0.01, %v1292_v28 }
 0x583   :  { %v1295_v30 = vsel %vm1293_vm5, %v1292_v28, %v1294_v29  ;;  %v1853_v29 = vld [vmem:[%s3461_s13] sm:$0x1] }
 0x584   :  { %v1297_v31 = vcombine.high %v1295_v30, %v1295_v30  ;;  %1303 = vst.msk [vmem:[#allocation3 + $0x1] sm:$0x1] %vm150_vm1, %v1295_v30  ;;  %1305 = vst.msk [vmem:[#allocation3 + $0x2] sm:$0x1] %vm150_vm1, %v1295_v30 }
 0x585   :  { %1308 = vst.msk [vmem:[#allocation3 + $0x2] sm:$0x2] %vm1307_vm4, %v1295_v30  ;;  %1310 = vst.msk [vmem:[#allocation3 + $0x3] sm:$0x2] %vm1307_vm4, %v1295_v30 }
 0x586   :  { %1313 = vst.msk [vmem:[#allocation3 + $0x3] sm:$0x4] %vm1312_vm6, %v1295_v30  ;;  %1315 = vst.msk [vmem:[#allocation3 + $0x4] sm:$0x4] %vm1312_vm6, %v1295_v30 }
 0x587   :  { %1318 = vst.msk [vmem:[#allocation3 + $0x4] sm:$0x8] %vm1317_vm7, %v1295_v30  ;;  %1320 = vst.msk [vmem:[#allocation3 + $0x5] sm:$0x8] %vm1317_vm7, %v1295_v30 }
 0x588   :  { %1304 = vst.msk [vmem:[#allocation3 + $0x11] sm:$0x1] %vm150_vm1, %v1297_v31  ;;  %1306 = vst.msk [vmem:[#allocation3 + $0x12] sm:$0x1] %vm150_vm1, %v1297_v31 }
 0x589   :  { %1309 = vst.msk [vmem:[#allocation3 + $0x12] sm:$0x2] %vm1307_vm4, %v1297_v31  ;;  %1311 = vst.msk [vmem:[#allocation3 + $0x13] sm:$0x2] %vm1307_vm4, %v1297_v31 }
 0x58a   :  { %1314 = vst.msk [vmem:[#allocation3 + $0x13] sm:$0x4] %vm1312_vm6, %v1297_v31  ;;  %1316 = vst.msk [vmem:[#allocation3 + $0x14] sm:$0x4] %vm1312_vm6, %v1297_v31 }
 0x58b   :  { %1319 = vst.msk [vmem:[#allocation3 + $0x14] sm:$0x8] %vm1317_vm7, %v1297_v31  ;;  %1321 = vst.msk [vmem:[#allocation3 + $0x15] sm:$0x8] %vm1317_vm7, %v1297_v31 }
 0x58e   :  { %v1328_v33 = vld [vmem:[#allocation3 + $0x1] sm:$0xff] }
 0x58f   :  { %v1322_v34 = vld [vmem:[#allocation3] sm:$0xff]  ;;  %2714 = vmatprep.mubr.msk.f32.mxu0 %vm647_vm3, %v1328_v33  ;;  %v1936_v33 = vld [vmem:[%s3462_s14] sm:$0x1] }
 0x590   :  { %2725 = vmatprep.mubr.msk.f32.mxu1 %vm647_vm3, %v1322_v34  ;;  %v1497_v38 = vld [vmem:[#allocation3 + $0x2] sm:$0xff] }
 0x591   :  { %v2078_v34 = vld [vmem:[#allocation15 + $0x38] sm:$0xff] }
 0x592   :  { %v1329_v35 = vld [vmem:[#allocation3 + $0x11] sm:$0xff] }
 0x593   :  { %v1323_v36 = vld [vmem:[#allocation3 + $0x10] sm:$0xff]  ;;  %2715 = vmatmul.mubr.msk.f32.vlgmr.msra.gmra.mxu0 %vm647_vm3, %v1329_v35  ;;  %v2069_v35 = vld [vmem:[#allocation15 + $0x18] sm:$0xff] }
 0x594   :  { %2726 = vmatmul.mubr.msk.f32.vlgmr.msra.gmra.mxu1 %vm647_vm3, %v1323_v36  ;;  %2729 = vmatpush3.msra.mxu0 %v1503_v20  ;;  %v1498_v41 = vld [vmem:[#allocation3 + $0x12] sm:$0xff] }
 0x595   :  { %2736 = vmatprep.mubr.msk.f32.mxu0 %vm647_vm3, %v1497_v38  ;;  %2730 = vmatprep.subr.mxu0 %v1502_v37  ;;  %v2077_v36 = vld [vmem:[#allocation15 + $0x30] sm:$0xff]  ;;  %v2076_v38 = vld [vmem:[#allocation15 + $0x28] sm:$0xff] }
 0x596   :  { %2747 = vmatprep.mubr.msk.f32.mxu1 %vm3014_vm2, %v3012_v0  ;;  %2731 = vmatpush3.msra.mxu0 %v1502_v37  ;;  %v2068_v37 = vld [vmem:[#allocation15 + $0x10] sm:$0xff] }
 0x597   :  { %2732 = vmatprep.subr.mxu0 %v1501_v39  ;;  %2740 = vmatpush3.msra.mxu1 %v1608_v42 }
 0x598   :  { %2733 = vmatpush3.msra.mxu0 %v1501_v39  ;;  %2741 = vmatprep.subr.mxu1 %v3012_v0  ;;  %v2067_v39 = vld [vmem:[#allocation15 + $0x8] sm:$0xff] }
 0x599   :  { %2734 = vmatprep.subr.mxu0 %v1500_v40  ;;  %2742 = vmatpush3.msra.mxu1 %v1607_v43 }
 0x59a   :  { %2735 = vmatpush3.msra.mxu0 %v1500_v40  ;;  %2743 = vmatprep.subr.mxu1 %v3012_v0  ;;  %v2066_v40 = vld [vmem:[#allocation15] sm:$0xff] }
 0x59b   :  { %2737 = vmatmul.mubr.msk.f32.vlgmr.msra.gmra.mxu0 %vm647_vm3, %v1498_v41  ;;  %2750 = vmatprep.subr.mxu0 %v3012_v0  ;;  %v3383_v41 = vld [vmem:[#allocation15 + $0x58] sm:$0xff] }
 0x59c   :  { %2752 = vmatprep.mubr.msk.f32.mxu0 %vm3014_vm2, %v3012_v0  ;;  %2744 = vmatpush3.msra.mxu1 %v1606_v44 }
 0x59d   :  { %2745 = vmatprep.subr.mxu1 %v3012_v0  ;;  %2751 = vmatpush3.msk.msra.mxu0 %vm1688_vm8, %v3344_v46 }
 0x59e   :  { %2746 = vmatpush3.msra.mxu1 %v1605_v45  ;;  %2766 = vmatprep.subr.mxu0 %v3012_v0 }
 0x59f   :  { %2755 = vmatprep.subr.mxu1 %v3012_v0 }
 0x653   :  { %v2716_v48 = vpop.f32.mrf.mxu0 }
 0x654   :  { %v2727_v49 = vpop.f32.mrf.mxu1 }
 0x655   :  { %v1407_v47 = vpop.f32.mrf.mxu0  ;;  %v1494_v51 = vadd.f32 %v2727_v49, %v2716_v48 }
 0x656   :  { %v1488_v50 = vpop.f32.mrf.mxu1 }
 0x657   :  { %v1489_v54 = vadd.f32 %v1488_v50, %v1407_v47 }
 0x65b   :  { %v2738_v52 = vpop.f32.mrf.mxu0 }
 0x65c   :  { %v1586_v56 = vadd.f32 %v2738_v52, %v1494_v51 }
 0x65d   :  { %v1576_v57 = vpop.f32.mrf.mxu0 }
 0x65e   :  { %v1595_v58 = vadd.f32 %v2451_v53, %v1586_v56  ;;  %v1585_v59 = vadd.f32 %v1576_v57, %v1489_v54 }
 0x660   :  { %v1594_v60 = vadd.f32 %v2451_v53, %v1585_v59  ;;  %v1597_v61 = vsel %vm647_vm3, %v1595_v58, 0.0 }
 0x662   :  { %v1596_v62 = vsel %vm647_vm3, %v1594_v60, 0.0 }
 0x663   :  { %v1598_v63 = vadd.f32 %v1597_v61, %v1596_v62 }
 0x665   :  { %v1599_v1 = vrot.slane %v1598_v63, 4 }
 0x667   :  { %v1600_v2 = vadd.f32 %v1599_v1, %v1598_v63  ;;  %v2279_v63 = vld [vmem:[#allocation15 + $0x48] sm:$0xff] }
 0x669   :  { %v1601_v3 = vrot.slane %v1600_v2, 2 }
 0x66b   :  { %v1602_v4 = vadd.f32 %v1601_v3, %v1600_v2  ;;  %v2278_v2 = vld [vmem:[#allocation15 + $0x40] sm:$0xff] }
 0x66d   :  { %v1603_v5 = vrot.slane %v1602_v4, 1 }
 0x66f   :  { %v1604_v6 = vadd.f32 %v1603_v5, %v1602_v4 }
 0x671   :  { %2748 = vmatmul.mubr.msk.f32.vlgmr.msra.gmra.mxu1 %vm647_vm3, %v1604_v6 }
 0x672   :  { %2756 = vmatpush3.msra.mxu1 %v1608_v42  ;;  %2763 = vmatprep.mubr.msk.f32.mxu1 %vm3014_vm2, %v3012_v0 }
 0x673   :  { %2757 = vmatprep.subr.mxu1 %v3012_v0 }
 0x674   :  { %2758 = vmatpush3.msra.mxu1 %v1607_v43 }
 0x675   :  { %2759 = vmatprep.subr.mxu1 %v3012_v0 }
 0x676   :  { %2760 = vmatpush3.msra.mxu1 %v1606_v44 }
 0x677   :  { %2761 = vmatprep.subr.mxu1 %v3012_v0 }
 0x678   :  { %2762 = vmatpush3.msra.mxu1 %v1605_v45 }
 0x679   :  { %2776 = vmatprep.subr.mxu1 %v2078_v34 }
 0x731   :  { %v1678_v32 = vpop.f32.mrf.mxu1 }
 0x732   :  { %v1682_v7 = vmul.f32 0.0078125, %v1678_v32 }
 0x733   :  { %v2749_v8 = vpop.f32.mrf.mxu1 }
 0x734   :  { %2753 = vmatmul.mubr.msk.f32.vlgmr.msra.gmra.mxu0 %vm1684_vm9, %v1682_v7 }
 0x735   :  { %2767 = vmatpush3.msk.msra.mxu0 %vm1688_vm8, %v3344_v46  ;;  %2768 = vmatprep.mubr.msk.f32.mxu0 %vm3014_vm2, %v3012_v0 }
 0x736   :  { %2771 = vmatprep.subr.mxu0 %v3012_v0 }
 0x7f4   :  { %v1758_v9 = vpop.f32.mrf.mxu0 }
 0x7f5   :  { %v1765_v10 = vrot.slane %v1758_v9, %v3293_v55 }
 0x7f6   :  { %v2754_v11 = vpop.f32.mrf.mxu0 }
 0x7f7   :  { %v1766_v12 = vsub.f32 %v1594_v60, %v1765_v10  ;;  %v1767_v13 = vsub.f32 %v1595_v58, %v1765_v10  ;;  %v2280_v60 = vld [vmem:[#allocation15 + $0x50] sm:$0xff] }
 0x7f9   :  { %v1768_v14 = vmul.f32 %v1766_v12, %v1766_v12  ;;  %v1769_v15 = vmul.f32 %v1767_v13, %v1767_v13 }
 0x7fb   :  { %v1770_v16 = vsel %vm647_vm3, %v1768_v14, 0.0  ;;  %v1771_v17 = vsel %vm647_vm3, %v1769_v15, 0.0 }
 0x7fc   :  { %v1772_v18 = vadd.f32 %v1771_v17, %v1770_v16  ;;  %v2472_v16 = vld [vmem:[%s3464_s16] ss:$0 sm:$0xff] }
 0x7fe   :  { %v1773_v19 = vrot.slane %v1772_v18, 4 }
 0x800   :  { %v1774_v20 = vadd.f32 %v1773_v19, %v1772_v18 }
 0x802   :  { %v1775_v21 = vrot.slane %v1774_v20, 2 }
 0x804   :  { %v1776_v22 = vadd.f32 %v1775_v21, %v1774_v20 }
 0x806   :  { %v1777_v23 = vrot.slane %v1776_v22, 1 }
 0x808   :  { %v1778_v24 = vadd.f32 %v1777_v23, %v1776_v22 }
 0x80a   :  { %2764 = vmatmul.mubr.msk.f32.vlgmr.msra.gmra.mxu1 %vm647_vm3, %v1778_v24 }
 0x80b   :  { %2777 = vmatpush3.msra.mxu1 %v2078_v34 }
 0x80c   :  { %2778 = vmatprep.subr.mxu1 %v2077_v36 }
 0x80d   :  { %2779 = vmatpush3.msra.mxu1 %v2077_v36 }
 0x80e   :  { %2780 = vmatprep.subr.mxu1 %v2076_v38 }
 0x80f   :  { %2781 = vmatpush3.msra.mxu1 %v2076_v38 }
 0x8ca   :  { %v1848_v25 = vpop.f32.mrf.mxu1 }
 0x8cb   :  { %v1852_v26 = vmul.f32 0.0078125, %v1848_v25 }
 0x8cc   :  { %v2765_v27 = vpop.f32.mrf.mxu1 }
 0x8cd   :  { %v1854_v28 = vadd.f32 1e-05, %v1852_v26 }
 0x8cf   :  { %2837 = vrsqrt.f32 %v1854_v28 }
 0x8dc   :  { %v2838_v30 = vpop.eup %2837 }
 0x8dd   :  { %v1856_v31 = vmul.f32 %v2838_v30, %v1853_v29 }
 0x8df   :  { %2769 = vmatmul.mubr.msk.f32.vlgmr.msra.gmra.mxu0 %vm1684_vm9, %v1856_v31 }
 0x8e0   :  { %2772 = vmatpush3.msk.msra.mxu0 %vm1688_vm8, %v3344_v46  ;;  %2773 = vmatprep.mubr.msk.f32.mxu0 %vm3014_vm2, %v3012_v0  ;;  %v2075_v0 = vld [vmem:[#allocation15 + $0x20] sm:$0xff] }
 0x8e1   :  { %2790 = vmatprep.subr.mxu0 %v2069_v35  ;;  %2782 = vmatprep.subr.mxu1 %v2075_v0 }
 0x8e2   :  { %2783 = vmatpush3.msra.mxu1 %v2075_v0 }
 0x8e3   :  { %2774 = vmatmul.mubr.msk.f32.vlgmr.msra.gmra.mxu0 %vm1684_vm9, %v1936_v33  ;;  %2804 = vmatprep.subr.mxu1 %v3383_v41 }
 0x8e4   :  { %2791 = vmatpush3.msra.mxu0 %v2069_v35 }
 0x8e5   :  { %2792 = vmatprep.subr.mxu0 %v2068_v37 }
 0x8e6   :  { %2793 = vmatpush3.msra.mxu0 %v2068_v37 }
 0x8e7   :  { %2794 = vmatprep.subr.mxu0 %v2067_v39 }
 0x8e8   :  { %2795 = vmatpush3.msra.mxu0 %v2067_v39 }
 0x8e9   :  { %2796 = vmatprep.subr.mxu0 %v2066_v40 }
 0x8ea   :  { %2797 = vmatpush3.msra.mxu0 %v2066_v40 }
 0x99f   :  { %v1926_v42 = vpop.f32.mrf.mxu0 }
 0x9a0   :  { %v1933_v43 = vrot.slane %v1926_v42, %v3293_v55 }
 0x9a1   :  { %v2770_v44 = vpop.f32.mrf.mxu0 }
 0x9a2   :  { %v1934_v46 = vmul.f32 %v1933_v43, %v1766_v12  ;;  %v1935_v48 = vmul.f32 %v1933_v43, %v1767_v13 }
 0x9a3   :  { %v2006_v45 = vpop.f32.mrf.mxu0 }
 0x9a4   :  { %v2013_v49 = vrot.slane %v2006_v45, %v3293_v55 }
 0x9a5   :  { %v2775_v47 = vpop.f32.mrf.mxu0 }
 0x9a6   :  { %v2014_v50 = vadd.f32 %v2013_v49, %v1934_v46  ;;  %v2015_v51 = vadd.f32 %v2013_v49, %v1935_v48 }
 0x9a8   :  { %vm2016_vm14 = vcmp.gt.f32.partialorder %v2014_v50, 0.0  ;;  %vm2017_vm15 = vcmp.gt.f32.partialorder %v2015_v51, 0.0  ;;  %v2018_v52 = vmul.f32 0.01, %v2014_v50  ;;  %v2019_v53 = vmul.f32 0.01, %v2015_v51 }
 0x9aa   :  { %v2020_v54 = vsel %vm2016_vm14, %v2014_v50, %v2018_v52  ;;  %v2021_v56 = vsel %vm2017_vm15, %v2015_v51, %v2019_v53 }
 0x9ab   :  { %2026 = vst.msk [vmem:[#allocation4 + $0x1] sm:$0x1] %vm150_vm1, %v2020_v54  ;;  %2027 = vst.msk [vmem:[#allocation4 + $0x19] sm:$0x1] %vm150_vm1, %v2021_v56 }
 0x9ac   :  { %2028 = vst.msk [vmem:[#allocation4 + $0x2] sm:$0x1] %vm150_vm1, %v2020_v54  ;;  %2029 = vst.msk [vmem:[#allocation4 + $0x1a] sm:$0x1] %vm150_vm1, %v2021_v56 }
 0x9ad   :  { %2030 = vst.msk [vmem:[#allocation4 + $0x2] sm:$0x2] %vm1307_vm4, %v2020_v54  ;;  %2031 = vst.msk [vmem:[#allocation4 + $0x1a] sm:$0x2] %vm1307_vm4, %v2021_v56 }
 0x9ae   :  { %2032 = vst.msk [vmem:[#allocation4 + $0x3] sm:$0x2] %vm1307_vm4, %v2020_v54  ;;  %2033 = vst.msk [vmem:[#allocation4 + $0x1b] sm:$0x2] %vm1307_vm4, %v2021_v56 }
 0x9af   :  { %2034 = vst.msk [vmem:[#allocation4 + $0x3] sm:$0x4] %vm1312_vm6, %v2020_v54  ;;  %2035 = vst.msk [vmem:[#allocation4 + $0x1b] sm:$0x4] %vm1312_vm6, %v2021_v56 }
 0x9b0   :  { %2036 = vst.msk [vmem:[#allocation4 + $0x4] sm:$0x4] %vm1312_vm6, %v2020_v54  ;;  %2037 = vst.msk [vmem:[#allocation4 + $0x1c] sm:$0x4] %vm1312_vm6, %v2021_v56 }
 0x9b1   :  { %2038 = vst.msk [vmem:[#allocation4 + $0x4] sm:$0x8] %vm1317_vm7, %v2020_v54  ;;  %2039 = vst.msk [vmem:[#allocation4 + $0x1c] sm:$0x8] %vm1317_vm7, %v2021_v56 }
 0x9b2   :  { %2040 = vst.msk [vmem:[#allocation4 + $0x5] sm:$0x8] %vm1317_vm7, %v2020_v54  ;;  %2041 = vst.msk [vmem:[#allocation4 + $0x1d] sm:$0x8] %vm1317_vm7, %v2021_v56 }
 0x9b3   :  { %2043 = vst.msk [vmem:[#allocation4 + $0x5] sm:$0x10] %vm2042_vm10, %v2020_v54  ;;  %2045 = vst.msk [vmem:[#allocation4 + $0x6] sm:$0x10] %vm2042_vm10, %v2020_v54 }
 0x9b4   :  { %2048 = vst.msk [vmem:[#allocation4 + $0x6] sm:$0x20] %vm2047_vm11, %v2020_v54  ;;  %2050 = vst.msk [vmem:[#allocation4 + $0x7] sm:$0x20] %vm2047_vm11, %v2020_v54 }
 0x9b5   :  { %2053 = vst.msk [vmem:[#allocation4 + $0x7] sm:$0x40] %vm2052_vm12, %v2020_v54  ;;  %2055 = vst.msk [vmem:[#allocation4 + $0x8] sm:$0x40] %vm2052_vm12, %v2020_v54 }
 0x9b6   :  { %2058 = vst.msk [vmem:[#allocation4 + $0x8] sm:$0x80] %vm2057_vm13, %v2020_v54  ;;  %2060 = vst.msk [vmem:[#allocation4 + $0x9] sm:$0x80] %vm2057_vm13, %v2020_v54 }
 0x9b7   :  { %2044 = vst.msk [vmem:[#allocation4 + $0x1d] sm:$0x10] %vm2042_vm10, %v2021_v56  ;;  %2046 = vst.msk [vmem:[#allocation4 + $0x1e] sm:$0x10] %vm2042_vm10, %v2021_v56 }
 0x9b8   :  { %2049 = vst.msk [vmem:[#allocation4 + $0x1e] sm:$0x20] %vm2047_vm11, %v2021_v56  ;;  %2051 = vst.msk [vmem:[#allocation4 + $0x1f] sm:$0x20] %vm2047_vm11, %v2021_v56  ;;  %v2062_v57 = vld [vmem:[#allocation4] sm:$0xff]  ;;  %v2064_v62 = vld [vmem:[#allocation4 + $0x18] sm:$0xff] }
 0x9b9   :  { %2054 = vst.msk [vmem:[#allocation4 + $0x1f] sm:$0x40] %vm2052_vm12, %v2021_v56  ;;  %2056 = vst.msk [vmem:[#allocation4 + $0x20] sm:$0x40] %vm2052_vm12, %v2021_v56  ;;  %v2070_v55 = vld [vmem:[#allocation4 + $0x1] sm:$0xff]  ;;  %2798 = vmatprep.mubr.msk.f32.mxu0 %vm647_vm3, %v2062_v57  ;;  %v2072_v61 = vld [vmem:[#allocation4 + $0x19] sm:$0xff] }
 0x9ba   :  { %2059 = vst.msk [vmem:[#allocation4 + $0x20] sm:$0x80] %vm2057_vm13, %v2021_v56  ;;  %2061 = vst.msk [vmem:[#allocation4 + $0x21] sm:$0x80] %vm2057_vm13, %v2021_v56  ;;  %2784 = vmatprep.mubr.msk.f32.mxu1 %vm647_vm3, %v2070_v55  ;;  %v2273_v4 = vld [vmem:[#allocation4 + $0x2] sm:$0xff] }
 0x9bd   :  { %v2071_v58 = vld [vmem:[#allocation4 + $0x9] sm:$0xff] }
 0x9be   :  { %v2063_v59 = vld [vmem:[#allocation4 + $0x8] sm:$0xff]  ;;  %2785 = vmatmul.mubr.msk.f32.vlgmr.msra.gmra.mxu1 %vm647_vm3, %v2071_v58  ;;  %v2275_v6 = vld [vmem:[#allocation4 + $0x1a] sm:$0xff] }
 0x9bf   :  { %2799 = vmatmul.mubr.msk.f32.vlgmr.msra.gmra.mxu0 %vm647_vm3, %v2063_v59  ;;  %2805 = vmatpush3.msra.mxu1 %v3383_v41  ;;  %v2274_v5 = vld [vmem:[#allocation4 + $0xa] sm:$0xff] }
 0x9c0   :  { %2787 = vmatprep.mubr.msk.f32.mxu1 %vm647_vm3, %v2072_v61  ;;  %2801 = vmatprep.mubr.msk.f32.mxu0 %vm647_vm3, %v2064_v62 }
 0x9c1   :  { %2806 = vmatprep.subr.mxu1 %v2280_v60  ;;  %v2073_v1 = vld [vmem:[#allocation4 + $0x21] sm:$0xff] }
 0x9c2   :  { %2807 = vmatpush3.msra.mxu1 %v2280_v60  ;;  %v2065_v3 = vld [vmem:[#allocation4 + $0x20] sm:$0xff] }
 0x9c3   :  { %2808 = vmatprep.subr.mxu1 %v2279_v63  ;;  %2788 = vmatmul.mubr.msk.f32.gmra.mxu1 %vm647_vm3, %v2073_v1  ;;  %v2276_v32 = vld [vmem:[#allocation4 + $0x22] sm:$0xff] }
 0x9c4   :  { %2802 = vmatmul.mubr.msk.f32.gmra.mxu0 %vm647_vm3, %v2065_v3  ;;  %2809 = vmatpush3.msra.mxu1 %v2279_v63 }
 0x9c5   :  { %2810 = vmatprep.subr.mxu1 %v2278_v2  ;;  %2812 = vmatprep.mubr.msk.f32.mxu1 %vm647_vm3, %v2273_v4 }
 0x9c6   :  { %2811 = vmatpush3.msra.mxu1 %v2278_v2 }
 0x9c7   :  { %2813 = vmatmul.mubr.msk.f32.vlgmr.msra.gmra.mxu1 %vm647_vm3, %v2274_v5 }
 0x9c8   :  { %2815 = vmatprep.mubr.msk.f32.mxu1 %vm647_vm3, %v2275_v6 }
 0x9cb   :  { %2816 = vmatmul.mubr.msk.f32.gmra.mxu1 %vm647_vm3, %v2276_v32 }
 0xa7e   :  { %v2786_v7 = vpop.f32.mrf.mxu1 }
 0xa7f   :  { %v2800_v8 = vpop.f32.mrf.mxu0 }
 0xa80   :  { %v2157_v9 = vpop.f32.mrf.mxu1  ;;  %v2260_v14 = vadd.f32 %v2800_v8, %v2786_v7 }
 0xa81   :  { %v2254_v10 = vpop.f32.mrf.mxu0 }
 0xa82   :  { %v2255_v17 = vadd.f32 %v2254_v10, %v2157_v9 }
 0xa83   :  { %v2789_v11 = vpop.f32.mrf.mxu1 }
 0xa84   :  { %v2803_v12 = vpop.f32.mrf.mxu0 }
 0xa85   :  { %v2167_v13 = vpop.f32.mrf.mxu1  ;;  %v2270_v21 = vadd.f32 %v2803_v12, %v2789_v11 }
 0xa86   :  { %v2264_v19 = vpop.f32.mrf.mxu0 }
 0xa87   :  { %v2814_v15 = vpop.f32.mrf.mxu1  ;;  %v2265_v25 = vadd.f32 %v2264_v19, %v2167_v13 }
 0xa88   :  { %v2380_v18 = vadd.f32 %v2814_v15, %v2260_v14 }
 0xa89   :  { %v2360_v20 = vpop.f32.mrf.mxu1 }
 0xa8a   :  { %v2391_v22 = vadd.f32 %v2472_v16, %v2380_v18  ;;  %v2379_v23 = vadd.f32 %v2360_v20, %v2255_v17 }
 0xa8b   :  { %v2817_v24 = vpop.f32.mrf.mxu1 }
 0xa8c   :  { %v2474_v26 = vmul.f32 -1.442695, %v2391_v22  ;;  %v2390_v27 = vadd.f32 %v2472_v16, %v2379_v23  ;;  %v2382_v28 = vadd.f32 %v2817_v24, %v2270_v21 }
 0xa8d   :  { %v2370_v29 = vpop.f32.mrf.mxu1 }
 0xa8e   :  { %2839 = vpow2.f32 %v2474_v26  ;;  %v2473_v30 = vmul.f32 -1.442695, %v2390_v27  ;;  %v2393_v31 = vadd.f32 %v2472_v16, %v2382_v28  ;;  %v2381_v33 = vadd.f32 %v2370_v29, %v2265_v25 }
 0xa90   :  { %2841 = vpow2.f32 %v2473_v30  ;;  %v2476_v34 = vmul.f32 -1.442695, %v2393_v31  ;;  %v2392_v35 = vadd.f32 %v2472_v16, %v2381_v33 }
 0xa92   :  { %2843 = vpow2.f32 %v2476_v34  ;;  %v2475_v36 = vmul.f32 -1.442695, %v2392_v35 }
 0xa94   :  { %2845 = vpow2.f32 %v2475_v36 }
 0xa9b   :  { %v2840_v37 = vpop.eup %2839 }
 0xa9c   :  { %v2407_v38 = vadd.f32 1.0, %v2840_v37 }
 0xa9d   :  { %v2842_v39 = vpop.eup %2841 }
 0xa9e   :  { %2847 = vrcp.f32 %v2407_v38  ;;  %v2406_v0 = vadd.f32 1.0, %v2842_v39 }
 0xa9f   :  { %v2844_v40 = vpop.eup %2843 }
 0xaa0   :  { %2849 = vrcp.f32 %v2406_v0  ;;  %v2409_v41 = vadd.f32 1.0, %v2844_v40 }
 0xaa1   :  { %v2846_v42 = vpop.eup %2845 }
 0xaa2   :  { %2851 = vrcp.f32 %v2409_v41  ;;  %v2408_v43 = vadd.f32 1.0, %v2846_v42 }
 0xaa4   :  { %2853 = vrcp.f32 %v2408_v43 }
 0xaab   :  { %v2848_v44 = vpop.eup %2847 }
 0xaac   :  { %2420 = vst.msk [vmem:[%s3465_s17 + $0x8] sm:$0xff] %vm2418_vm0, %v2848_v44 }
 0xaad   :  { %v2850_v45 = vpop.eup %2849 }
 0xaae   :  { %2419 = vst.msk [vmem:[%s3465_s17] sm:$0xff] %vm2418_vm0, %v2850_v45 }
 0xaaf   :  { %v2852_v46 = vpop.eup %2851 }
 0xab0   :  { %2422 = vst.msk [vmem:[%s3465_s17 + $0x18] sm:$0xff] %vm2418_vm0, %v2852_v46 }
 0xab1   :  { %v2854_v48 = vpop.eup %2853 }
 0xab2   :  { %2421 = vst.msk [vmem:[%s3465_s17 + $0x10] sm:$0xff] %vm2418_vm0, %v2854_v48 }
 0xab3   :  { %2427 = vsyncpa [#allocation6], 1 }
 0xab4   :  { %2428 = vsyncpa [#allocation8], 1 }
 0xab5   :  { %2429 = vsyncpa [#allocation11], 1 }
 0xab6   :  { %2430 = vsyncpa [#allocation14], 1 }

</bundles_post_ra>
